<compile_context>
chip_gen: v5e
topology: v5e:2x2
jax: 0.10.0
libtpu: 0.0.40
codegen_flags: <defaults>
</compile_context>

<pallas_src>
import math
import functools

import jax
import jax.numpy as jnp
from jax.experimental import pallas as pl
from jax.experimental.pallas import tpu as pltpu


_LN_EPS = 1e-6      # matches nn.LayerNorm(..., eps=1e-06) in the module


# ---------------------------------------------------------------------------
# chip-aware budgets / helpers
# ---------------------------------------------------------------------------
@functools.lru_cache(maxsize=1)
def _vmem_limit_bytes():
    """Scoped-VMEM limit: 64 MiB on 128-MiB parts (v5e/v6e), 32 MiB on
    64-MiB parts (v7x)."""
    cap = 64 * 1024 * 1024
    try:
        cap = int(pltpu.get_tpu_info().vmem_capacity_bytes)
    except Exception:
        pass
    return 64 * 1024 * 1024 if cap >= 128 * 1024 * 1024 else 32 * 1024 * 1024


def _cp(sem, vmem_limit):
    return pltpu.CompilerParams(dimension_semantics=sem,
                                vmem_limit_bytes=vmem_limit)


def _pick_tile(dim, preferred, unit=8):
    """Largest legal tile <= preferred: the full dim, or a multiple of `unit`
    that divides `dim` (keeps the grid an exact division)."""
    if dim <= preferred:
        return dim
    t = (int(preferred) // unit) * unit
    while t >= unit:
        if dim % t == 0:
            return t
        t -= unit
    return dim


def _pick_attn_qtile(L, batch, n_head, d_k, d_v, budget_bytes):
    """Query-tile rows for the attention kernel.  The budget accounts for the
    double-buffered attn-probability / eld blocks and the resident packed
    k/v blocks, not just the in-flight f32 temporaries."""
    fixed = 4 * L * n_head * (2 * d_k + d_v)            # dbl-buffered bf16 q/k/v
    per_row = L * 4 * (2 * n_head + 12)                 # 2x attn out + 2x eld + temps
    avail = max(budget_bytes - fixed, 8 * per_row)
    tq = _pick_tile(L, max(8, avail // per_row), 8)
    # keep >=2 grid steps so v7x's 2 TensorCores both get work
    if batch * (L // tq) < 2:
        half = _pick_tile(L, max(8, tq // 2), 8)
        if half < tq:
            tq = half
    return tq


# ---------------------------------------------------------------------------
# Kernel 1: packed projection  x @ [W_q | W_k | W_v]  (one wide matmul)
# ---------------------------------------------------------------------------
def _proj_kernel(x_ref, w_ref, *out_refs, widths):
    # x cast to bf16 once per row tile; single wide matmul feeds the MXU.
    x = x_ref[...].astype(jnp.bfloat16)                       # (tr, d_model)
    y = jnp.dot(x, w_ref[...], preferred_element_type=jnp.float32)
    off = 0
    for r, wd in zip(out_refs, widths):
        r[...] = y[:, off:off + wd].astype(jnp.bfloat16)      # lane-dense store
        off += wd


def project_packed(x2, w_slab, widths, *, vmem_limit):
    """x2: (rows, d_model) f32; w_slab: (d_model, sum(widths)) bf16.
    Returns one lane-dense (rows, w) bf16 slab per width, head-packed along
    the last dim (columns [h*d:(h+1)*d] belong to head h)."""
    rows, dm = x2.shape
    ntot = w_slab.shape[1]
    tr = _pick_tile(rows, 512, 8)
    kernel = functools.partial(_proj_kernel, widths=tuple(widths))
    outs = pl.pallas_call(
        kernel,
        out_shape=tuple(jax.ShapeDtypeStruct((rows, wd), jnp.bfloat16)
                        for wd in widths),
        grid=(rows // tr,),
        in_specs=[pl.BlockSpec((tr, dm), lambda i: (i, 0)),
                  pl.BlockSpec((dm, ntot), lambda i: (0, 0))],
        out_specs=tuple(pl.BlockSpec((tr, wd), lambda i: (i, 0))
                        for wd in widths),
        compiler_params=_cp(("parallel",), vmem_limit),
    )(x2, w_slab)
    if not isinstance(outs, (tuple, list)):
        outs = (outs,)
    return tuple(outs)


# ---------------------------------------------------------------------------
# Kernel 2: LaS attention core (per batch, per query tile; heads in-kernel)
#   scores = (q / sqrt(dk)) @ k^T ;  e = alpha_c*(i - j) * scores   (eld input)
#   p = softmax(e) ; pooled = avg_pool1d(p, ks, stride=1, pad=(ks-1)//2)
#   out = pooled @ v    -> stored lane-dense as (tq, H*d_v)
# ---------------------------------------------------------------------------
def _las_attn_kernel(eld_ref, q_ref, k_ref, v_ref, o_ref, *attn_refs,
                     n_head, d_k, d_v, kernel_size):
    L = k_ref.shape[1]
    eld = eld_ref[...]                                        # (tq, L) f32, precomputed
    kidx = jax.lax.broadcasted_iota(jnp.int32, eld.shape, 1)  # one iota, reused
    pad = (kernel_size - 1) // 2
    head_outs = []
    # TODO(synk): for very large L*H move this static head loop onto a grid
    # axis (or lax.fori) if VMEM live-range pressure shows up in profiles.
    for h in range(n_head):
        q_h = q_ref[0, :, pl.ds(h * d_k, d_k)]                # (tq, d_k) bf16
        k_h = k_ref[0, :, pl.ds(h * d_k, d_k)]                # (L,  d_k) bf16
        v_h = v_ref[0, :, pl.ds(h * d_v, d_v)]                # (L,  d_v) bf16

        s = jnp.einsum('qd,kd->qk', q_h, k_h,
                       preferred_element_type=jnp.float32)    # (tq, L)
        e = eld * s                                           # eld folds alpha_c/sqrt(dk)

        m = jnp.max(e, axis=-1, keepdims=True)
        p = jnp.exp(e - m)
        p = p * (1.0 / jnp.sum(p, axis=-1, keepdims=True))    # exact: attn is observable

        # avg_pool1d(ks, stride=1, pad=(ks-1)//2, count_include_pad=True)
        # TODO(synk): for large kernel_size switch to a prefix-sum (cumsum)
        # formulation; the roll+mask loop is O(kernel_size) per head.
        pooled = p
        for off in range(-pad, kernel_size - pad):
            if off == 0:
                continue
            sh = pltpu.roll(p, shift=(-off) % L, axis=1)
            if off > 0:
                sh = jnp.where(kidx + off < L, sh, 0.0)
            else:
                sh = jnp.where(kidx + off >= 0, sh, 0.0)
            pooled = pooled + sh
        pooled = pooled * (1.0 / kernel_size)

        if attn_refs:
            attn_refs[0][0, h] = pooled                       # (tq, L) f32
        head_outs.append(jnp.dot(pooled.astype(jnp.bfloat16), v_h,
                                 preferred_element_type=jnp.float32))

    # single lane-dense store, already in the (.., H*d_v) layout the fc wants
    o_ref[0] = jnp.concatenate(head_outs, axis=-1).astype(jnp.bfloat16)


def las_attention(qp, kp, vp, eld, *, n_head, d_k, d_v, kernel_size,
                  return_attn, vmem_limit):
    """qp/kp: (B, L, H*d_k) bf16; vp: (B, L, H*d_v) bf16; eld: (L, L) f32.
    Returns (o_packed (B, L, H*d_v) bf16, attn (B, H, L, L) f32 or None)."""
    B, Lq, hdk = qp.shape
    Lk = kp.shape[1]
    assert Lq == Lk, "LaS attention requires len_q == len_k (square eld mask)"
    L = Lq
    hdv = vp.shape[2]
    tq = _pick_attn_qtile(L, B, n_head, d_k, d_v, vmem_limit // 2)
    kernel = functools.partial(_las_attn_kernel, n_head=n_head, d_k=d_k,
                               d_v=d_v, kernel_size=kernel_size)
    out_shape = [jax.ShapeDtypeStruct((B, L, hdv), jnp.bfloat16)]
    out_specs = [pl.BlockSpec((1, tq, hdv), lambda b, qi: (b, qi, 0))]
    if return_attn:
        # NOTE: largest HBM write of the layer; skipped entirely when the
        # caller does not consume slf_attn / enc_attn.
        out_shape.append(jax.ShapeDtypeStruct((B, n_head, L, L), jnp.float32))
        out_specs.append(pl.BlockSpec((1, n_head, tq, L),
                                      lambda b, qi: (b, 0, qi, 0)))
    res = pl.pallas_call(
        kernel,
        out_shape=tuple(out_shape),
        grid=(B, L // tq),
        in_specs=[pl.BlockSpec((tq, L), lambda b, qi: (qi, 0)),           # eld
                  pl.BlockSpec((1, tq, hdk), lambda b, qi: (b, qi, 0)),   # q
                  pl.BlockSpec((1, L, hdk), lambda b, qi: (b, 0, 0)),     # k (resident per b)
                  pl.BlockSpec((1, L, hdv), lambda b, qi: (b, 0, 0))],    # v (resident per b)
        out_specs=tuple(out_specs),
        compiler_params=_cp(("parallel", "parallel"), vmem_limit),
    )(eld, qp, kp, vp)
    if return_attn:
        o_packed, attn = res
    else:
        o_packed = res[0] if isinstance(res, (tuple, list)) else res
        attn = None
    return o_packed, attn


# ---------------------------------------------------------------------------
# Kernel 3: fc projection + residual + LayerNorm (single K = H*d_v matmul)
# ---------------------------------------------------------------------------
def _fc_res_ln_kernel(o_ref, w_ref, res_ref, g_ref, b_ref, out_ref):
    y = res_ref[...] + jnp.dot(o_ref[...], w_ref[...],
                               preferred_element_type=jnp.float32)
    mu = jnp.mean(y, axis=-1, keepdims=True)
    var = jnp.mean(jnp.square(y - mu), axis=-1, keepdims=True)
    out_ref[...] = (y - mu) * jax.lax.rsqrt(var + _LN_EPS) * g_ref[...] + b_ref[...]


def fc_residual_layernorm(o_packed, wfc, residual, gamma, beta, *, vmem_limit):
    """o_packed: (rows, H*d_v) bf16; wfc: (H*d_v, d_model) bf16;
    residual: (rows, d_model) f32."""
    rows, hdv = o_packed.shape
    dm = residual.shape[-1]
    tr = _pick_tile(rows, 512, 8)
    return pl.pallas_call(
        _fc_res_ln_kernel,
        out_shape=jax.ShapeDtypeStruct((rows, dm), jnp.float32),
        grid=(rows // tr,),
        in_specs=[pl.BlockSpec((tr, hdv), lambda i: (i, 0)),
                  pl.BlockSpec((hdv, dm), lambda i: (0, 0)),
                  pl.BlockSpec((tr, dm), lambda i: (i, 0)),
                  pl.BlockSpec((1, dm), lambda i: (0, 0)),
                  pl.BlockSpec((1, dm), lambda i: (0, 0))],
        out_specs=pl.BlockSpec((tr, dm), lambda i: (i, 0)),
        compiler_params=_cp(("parallel",), vmem_limit),
    )(o_packed, wfc, residual, gamma, beta)


# ---------------------------------------------------------------------------
# Kernel 4: PositionwiseFeedForward, fully fused, row-tiled
# ---------------------------------------------------------------------------
def _ffn_kernel(x_ref, w1_ref, b1_ref, w2_ref, b2_ref, g_ref, be_ref, out_ref):
    x = x_ref[...]                                            # (tr, d_model) f32
    h = jnp.dot(x.astype(jnp.bfloat16), w1_ref[...],
                preferred_element_type=jnp.float32) + b1_ref[...]
    h = jnp.maximum(h, 0.0)
    y = jnp.dot(h.astype(jnp.bfloat16), w2_ref[...],
                preferred_element_type=jnp.float32) + b2_ref[...]
    # TODO(synk): nn.Dropout(0.1) before the residual add is identity (eval).
    y = y + x
    mu = jnp.mean(y, axis=-1, keepdims=True)
    var = jnp.mean(jnp.square(y - mu), axis=-1, keepdims=True)
    out_ref[...] = (y - mu) * jax.lax.rsqrt(var + _LN_EPS) * g_ref[...] + be_ref[...]


def positionwise_ffn(x, p, *, vmem_limit):
    B, L, dm = x.shape
    di = p["w1"].shape[1]
    rows = B * L
    x2 = x.reshape(rows, dm)
    tr = _pick_tile(rows, 512, 8)
    # TODO(synk): w1/w2 have constant block indices and could be single
    # buffered (pipeline_mode=pl.Buffered(1)) to halve their VMEM footprint.
    y = pl.pallas_call(
        _ffn_kernel,
        out_shape=jax.ShapeDtypeStruct((rows, dm), jnp.float32),
        grid=(rows // tr,),
        in_specs=[pl.BlockSpec((tr, dm), lambda i: (i, 0)),
                  pl.BlockSpec((dm, di), lambda i: (0, 0)),
                  pl.BlockSpec((1, di), lambda i: (0, 0)),
                  pl.BlockSpec((di, dm), lambda i: (0, 0)),
                  pl.BlockSpec((1, dm), lambda i: (0, 0)),
                  pl.BlockSpec((1, dm), lambda i: (0, 0)),
                  pl.BlockSpec((1, dm), lambda i: (0, 0))],
        out_specs=pl.BlockSpec((tr, dm), lambda i: (i, 0)),
        compiler_params=_cp(("parallel",), vmem_limit),
    )(x2, p["w1"], p["b1"], p["w2"], p["b2"], p["gamma"], p["beta"])
    return y.reshape(B, L, dm)


# ---------------------------------------------------------------------------
# Module wrappers
# ---------------------------------------------------------------------------
def multi_head_attention(q_in, k_in, v_in, p, eld, *, n_head, d_k, d_v,
                         kernel_size, self_attention, return_attn=True):
    """Reproduces MultiHeadAttention.forward (eval).  Returns
    ((B, L, d_model) f32, attn (B, H, L, L) f32 or None)."""
    B, Lq, dm = q_in.shape
    Lk = k_in.shape[1]
    vlim = _vmem_limit_bytes()
    hdk, hdv = n_head * d_k, n_head * d_v
    q2 = q_in.reshape(B * Lq, dm)              # also the residual rows

    if self_attention:
        qp, kp, vp = project_packed(q2, p["w_qkv"], (hdk, hdk, hdv),
                                    vmem_limit=vlim)
    else:
        (qp,) = project_packed(q2, p["w_q"], (hdk,), vmem_limit=vlim)
        if k_in is v_in:
            kp, vp = project_packed(k_in.reshape(B * Lk, dm), p["w_kv"],
                                    (hdk, hdv), vmem_limit=vlim)
        else:
            (kp,) = project_packed(k_in.reshape(B * Lk, dm), p["w_k"], (hdk,),
                                   vmem_limit=vlim)
            (vp,) = project_packed(v_in.reshape(B * v_in.shape[1], dm),
                                   p["w_v"], (hdv,), vmem_limit=vlim)

    o_packed, attn = las_attention(
        qp.reshape(B, Lq, hdk), kp.reshape(B, Lk, hdk), vp.reshape(B, Lk, hdv),
        eld, n_head=n_head, d_k=d_k, d_v=d_v, kernel_size=kernel_size,
        return_attn=return_attn, vmem_limit=vlim)

    # TODO(synk): nn.Dropout(0.1) after fc is identity here (eval semantics).
    y = fc_residual_layernorm(o_packed.reshape(B * Lq, hdv), p["wfc"],
                              q2, p["gamma"], p["beta"], vmem_limit=vlim)
    return y.reshape(B, Lq, dm), attn


def decoder_layer(dec_input, enc_output, params, *, n_head, d_k, d_v,
                  alpha_c, kernel_size, return_attn=True):
    """DecoderLayer.forward: self-attn -> cross-attn -> position-wise FFN."""
    B, L, dm = dec_input.shape
    vlim = _vmem_limit_bytes()
    # eld coefficient matrix, hoisted out of the attention kernel:
    #   eld[i, j] = alpha_c * (i - j) / sqrt(d_k)   (1/sqrt(d_k) folded in)
    pos = jnp.arange(L, dtype=jnp.float32)
    eld = (float(alpha_c) / math.sqrt(d_k)) * (pos[:, None] - pos[None, :])

    dec1, slf_attn = multi_head_attention(
        dec_input, dec_input, dec_input, params["slf_attn"], eld,
        n_head=n_head, d_k=d_k, d_v=d_v, kernel_size=kernel_size,
        self_attention=True, return_attn=return_attn)
    dec2, enc_attn = multi_head_attention(
        dec1, enc_output, enc_output, params["enc_attn"], eld,
        n_head=n_head, d_k=d_k, d_v=d_v, kernel_size=kernel_size,
        self_attention=False, return_attn=return_attn)
    out = positionwise_ffn(dec2, params["pos_ffn"], vmem_limit=vlim)
    # matches q.unsqueeze(2) propagated through the PyTorch forward
    return out.reshape(B, L, 1, dm), slf_attn, enc_attn


# ---------------------------------------------------------------------------
# One-time parameter preparation (no per-call .T / concat of weights).
# Raw weights use the PyTorch nn.Linear layout (out_features, in_features).
# ---------------------------------------------------------------------------
def prepare_mha_params(raw):
    bf = jnp.bfloat16
    wq = jnp.asarray(raw["w_qs"]).T.astype(bf)       # (d_model, H*d_k)
    wk = jnp.asarray(raw["w_ks"]).T.astype(bf)
    wv = jnp.asarray(raw["w_vs"]).T.astype(bf)
    return {
        "w_qkv": jnp.concatenate([wq, wk, wv], axis=1),
        "w_q": wq,
        "w_k": wk,
        "w_v": wv,
        "w_kv": jnp.concatenate([wk, wv], axis=1),
        "wfc": jnp.asarray(raw["fc"]).T.astype(bf),  # (H*d_v, d_model)
        "gamma": jnp.asarray(raw["gamma"]).reshape(1, -1).astype(jnp.float32),
        "beta": jnp.asarray(raw["beta"]).reshape(1, -1).astype(jnp.float32),
    }


def prepare_ffn_params(raw):
    return {
        "w1": jnp.asarray(raw["w1"]).T.astype(jnp.bfloat16),   # (d_model, d_inner)
        "b1": jnp.asarray(raw["b1"]).reshape(1, -1).astype(jnp.float32),
        "w2": jnp.asarray(raw["w2"]).T.astype(jnp.bfloat16),   # (d_inner, d_model)
        "b2": jnp.asarray(raw["b2"]).reshape(1, -1).astype(jnp.float32),
        "gamma": jnp.asarray(raw["gamma"]).reshape(1, -1).astype(jnp.float32),
        "beta": jnp.asarray(raw["beta"]).reshape(1, -1).astype(jnp.float32),
    }


# ---------------------------------------------------------------------------
if __name__ == "__main__":
    # small shapes consistent with the module
    B, L = 2, 8
    d_model, d_inner = 32, 64
    n_head, d_k, d_v = 4, 8, 8
    b_param, current_head = 0.001, 1
    kernel_size = 3                      # args.kernel_size in the script
    assert kernel_size % 2 == 1, "only odd kernel_size matches avg_pool1d here"

    if current_head == 0:
        alpha_c = 0.0
    else:
        alpha_c = -1.0 * math.log(b_param / (n_head - 1) * current_head)

    key = jax.random.PRNGKey(0)
    ks = jax.random.split(key, 16)

    def mha_raw(i):
        return {
            "w_qs": 0.1 * jax.random.normal(ks[i + 0], (n_head * d_k, d_model), jnp.float32),
            "w_ks": 0.1 * jax.random.normal(ks[i + 1], (n_head * d_k, d_model), jnp.float32),
            "w_vs": 0.1 * jax.random.normal(ks[i + 2], (n_head * d_v, d_model), jnp.float32),
            "fc":   0.1 * jax.random.normal(ks[i + 3], (d_model, n_head * d_v), jnp.float32),
            "gamma": jnp.ones((d_model,), jnp.float32),
            "beta":  jnp.zeros((d_model,), jnp.float32),
        }

    ffn_raw = {
        "w1": 0.1 * jax.random.normal(ks[8], (d_inner, d_model), jnp.float32),
        "b1": 0.01 * jax.random.normal(ks[9], (d_inner,), jnp.float32),
        "w2": 0.1 * jax.random.normal(ks[10], (d_model, d_inner), jnp.float32),
        "b2": 0.01 * jax.random.normal(ks[11], (d_model,), jnp.float32),
        "gamma": jnp.ones((d_model,), jnp.float32),
        "beta":  jnp.zeros((d_model,), jnp.float32),
    }

    params = {
        "slf_attn": prepare_mha_params(mha_raw(0)),
        "enc_attn": prepare_mha_params(mha_raw(4)),
        "pos_ffn": prepare_ffn_params(ffn_raw),
    }

    dec_input = jax.random.normal(ks[12], (B, L, d_model), jnp.float32)
    enc_output = jax.random.normal(ks[13], (B, L, d_model), jnp.float32)

    fwd = jax.jit(functools.partial(decoder_layer, n_head=n_head, d_k=d_k,
                                    d_v=d_v, alpha_c=alpha_c,
                                    kernel_size=kernel_size))
    out, slf_attn, enc_attn = fwd(dec_input, enc_output, params)
    jax.block_until_ready((out, slf_attn, enc_attn))

    assert out.shape == (B, L, 1, d_model)
    assert slf_attn.shape == (B, n_head, L, L)
    assert enc_attn.shape == (B, n_head, L, L)
    print("KERNEL_OK")
</pallas_src>

<mosaic_0001>
module attributes {stable_mosaic.version = 11 : i64} {
  func.func @_proj_kernel(%arg0: i32, %arg1: memref<16x32xf32, #tpu.memory_space<vmem>>, %arg2: memref<32x96xbf16, #tpu.memory_space<vmem>>, %arg3: memref<16x32xbf16, #tpu.memory_space<vmem>>, %arg4: memref<16x32xbf16, #tpu.memory_space<vmem>>, %arg5: memref<16x32xbf16, #tpu.memory_space<vmem>>) attributes {dimension_semantics = [#tpu.dimension_semantics<parallel>], iteration_bounds = array<i64: 1>, scalar_prefetch = 0 : i64, scratch_operands = 0 : i64, tpu.core_type = #tpu.core_type<tc>, window_params = [{transform_indices = @transform_0, window_bounds = array<i64: 16, 32>}, {pipeline_mode = #tpu.pipeline_mode<synchronous>, transform_indices = @transform_1, window_bounds = array<i64: 32, 96>}, {transform_indices = @transform_2, window_bounds = array<i64: 16, 32>}, {transform_indices = @transform_3, window_bounds = array<i64: 16, 32>}, {transform_indices = @transform_4, window_bounds = array<i64: 16, 32>}]} {
    %c0 = arith.constant 0 : index
    %c0_0 = arith.constant 0 : index
    %0 = vector.load %arg1[%c0, %c0_0] : memref<16x32xf32, #tpu.memory_space<vmem>>, vector<16x32xf32>
    %1 = arith.truncf %0 : vector<16x32xf32> to vector<16x32xbf16>
    %c0_1 = arith.constant 0 : index
    %c0_2 = arith.constant 0 : index
    %2 = vector.load %arg2[%c0_1, %c0_2] : memref<32x96xbf16, #tpu.memory_space<vmem>>, vector<32x96xbf16>
    %cst = arith.constant dense<0.000000e+00> : vector<16x96xf32>
    %3 = tpu.matmul %1, %2, %cst {dimension_numbers = #tpu.dot_dimension_numbers<[1], [0], [0], [1], [0, 0, 1, 1], [], []>} : vector<16x32xbf16>, vector<32x96xbf16>, vector<16x96xf32> -> vector<16x96xf32>
    %4 = vector.extract_strided_slice %3 {offsets = [0, 0], sizes = [16, 32], strides = [1, 1]} : vector<16x96xf32> to vector<16x32xf32>
    %5 = arith.truncf %4 : vector<16x32xf32> to vector<16x32xbf16>
    %c0_3 = arith.constant 0 : index
    %c0_4 = arith.constant 0 : index
    %6 = vector.load %arg3[%c0_3, %c0_4] : memref<16x32xbf16, #tpu.memory_space<vmem>>, vector<16x32xbf16>
    tpu.vector_store %arg3[%c0_3, %c0_4], %5 {strides = array<i32>} : memref<16x32xbf16, #tpu.memory_space<vmem>>, vector<16x32xbf16>,
    %7 = vector.extract_strided_slice %3 {offsets = [0, 32], sizes = [16, 32], strides = [1, 1]} : vector<16x96xf32> to vector<16x32xf32>
    %8 = arith.truncf %7 : vector<16x32xf32> to vector<16x32xbf16>
    %c0_5 = arith.constant 0 : index
    %c0_6 = arith.constant 0 : index
    %9 = vector.load %arg4[%c0_5, %c0_6] : memref<16x32xbf16, #tpu.memory_space<vmem>>, vector<16x32xbf16>
    tpu.vector_store %arg4[%c0_5, %c0_6], %8 {strides = array<i32>} : memref<16x32xbf16, #tpu.memory_space<vmem>>, vector<16x32xbf16>,
    %10 = vector.extract_strided_slice %3 {offsets = [0, 64], sizes = [16, 32], strides = [1, 1]} : vector<16x96xf32> to vector<16x32xf32>
    %11 = arith.truncf %10 : vector<16x32xf32> to vector<16x32xbf16>
    %c0_7 = arith.constant 0 : index
    %c0_8 = arith.constant 0 : index
    %12 = vector.load %arg5[%c0_7, %c0_8] : memref<16x32xbf16, #tpu.memory_space<vmem>>, vector<16x32xbf16>
    tpu.vector_store %arg5[%c0_7, %c0_8], %11 {strides = array<i32>} : memref<16x32xbf16, #tpu.memory_space<vmem>>, vector<16x32xbf16>,
    return
  }
  func.func @transform_0(%arg0: i32) -> (i32, i32) {
    %c0_i32 = arith.constant 0 : i32
    %c0_i32_0 = arith.constant 0 : i32
    return %arg0, %c0_i32 : i32, i32
  }
  func.func @transform_1(%arg0: i32) -> (i32, i32) {
    %c0_i32 = arith.constant 0 : i32
    %c0_i32_0 = arith.constant 0 : i32
    %c0_i32_1 = arith.constant 0 : i32
    return %c0_i32, %c0_i32_0 : i32, i32
  }
  func.func @transform_2(%arg0: i32) -> (i32, i32) {
    %c0_i32 = arith.constant 0 : i32
    %c0_i32_0 = arith.constant 0 : i32
    return %arg0, %c0_i32 : i32, i32
  }
  func.func @transform_3(%arg0: i32) -> (i32, i32) {
    %c0_i32 = arith.constant 0 : i32
    %c0_i32_0 = arith.constant 0 : i32
    return %arg0, %c0_i32 : i32, i32
  }
  func.func @transform_4(%arg0: i32) -> (i32, i32) {
    %c0_i32 = arith.constant 0 : i32
    %c0_i32_0 = arith.constant 0 : i32
    return %arg0, %c0_i32 : i32, i32
  }
}

module attributes {stable_mosaic.version = 11 : i64} {
  func.func @_las_attn_kernel(%arg0: i32, %arg1: i32, %arg2: memref<8x8xf32, #tpu.memory_space<vmem>>, %arg3: memref<1x8x32xbf16, #tpu.memory_space<vmem>>, %arg4: memref<1x8x32xbf16, #tpu.memory_space<vmem>>, %arg5: memref<1x8x32xbf16, #tpu.memory_space<vmem>>, %arg6: memref<1x8x32xbf16, #tpu.memory_space<vmem>>, %arg7: memref<1x4x8x8xf32, #tpu.memory_space<vmem>>) attributes {dimension_semantics = [#tpu.dimension_semantics<parallel>, #tpu.dimension_semantics<parallel>], iteration_bounds = array<i64: 2, 1>, scalar_prefetch = 0 : i64, scratch_operands = 0 : i64, tpu.core_type = #tpu.core_type<tc>, window_params = [{transform_indices = @transform_0, window_bounds = array<i64: 8, 8>}, {transform_indices = @transform_1, window_bounds = array<i64: 1, 8, 32>}, {transform_indices = @transform_2, window_bounds = array<i64: 1, 8, 32>}, {transform_indices = @transform_3, window_bounds = array<i64: 1, 8, 32>}, {transform_indices = @transform_4, window_bounds = array<i64: 1, 8, 32>}, {transform_indices = @transform_5, window_bounds = array<i64: 1, 4, 8, 8>}]} {
    %c0 = arith.constant 0 : index
    %c0_0 = arith.constant 0 : index
    %0 = vector.load %arg2[%c0, %c0_0] : memref<8x8xf32, #tpu.memory_space<vmem>>, vector<8x8xf32>
    %1 = tpu.iota {dimensions = array<i32: 1>} : vector<8x8xi32>
    %c0_1 = arith.constant 0 : index
    %c0_2 = arith.constant 0 : index
    %c0_3 = arith.constant 0 : index
    %2 = vector.load %arg3[%c0_1, %c0_2, %c0_3] : memref<1x8x32xbf16, #tpu.memory_space<vmem>>, vector<1x8x8xbf16>
    %3 = vector.shape_cast %2 : vector<1x8x8xbf16> to vector<8x8xbf16>
    %c0_4 = arith.constant 0 : index
    %c0_5 = arith.constant 0 : index
    %c0_6 = arith.constant 0 : index
    %4 = vector.load %arg4[%c0_4, %c0_5, %c0_6] : memref<1x8x32xbf16, #tpu.memory_space<vmem>>, vector<1x8x8xbf16>
    %5 = vector.shape_cast %4 : vector<1x8x8xbf16> to vector<8x8xbf16>
    %c0_7 = arith.constant 0 : index
    %c0_8 = arith.constant 0 : index
    %c0_9 = arith.constant 0 : index
    %6 = vector.load %arg5[%c0_7, %c0_8, %c0_9] : memref<1x8x32xbf16, #tpu.memory_space<vmem>>, vector<1x8x8xbf16>
    %7 = vector.shape_cast %6 : vector<1x8x8xbf16> to vector<8x8xbf16>
    "tpu.trace_start"() <{level = 10 : i32, message = "qd,kd->qk"}> : () -> ()
    %cst = arith.constant dense<0.000000e+00> : vector<8x8xf32>
    %8 = tpu.matmul %3, %5, %cst {dimension_numbers = #tpu.dot_dimension_numbers<[1], [1], [0], [0], [0, 0, 1, 0], [], []>} : vector<8x8xbf16>, vector<8x8xbf16>, vector<8x8xf32> -> vector<8x8xf32>
    "tpu.trace_stop"() : () -> ()
    %9 = arith.mulf %0, %8 : vector<8x8xf32>
    %cst_10 = arith.constant dense<0xFF800000> : vector<8xf32>
    %10 = vector.multi_reduction <maximumf>, %9, %cst_10 [1] : vector<8x8xf32> to vector<8xf32>
    %11 = vector.shape_cast %10 : vector<8xf32> to vector<8x1xf32>
    %12 = vector.broadcast %11 : vector<8x1xf32> to vector<8x8xf32>
    %13 = arith.subf %9, %12 : vector<8x8xf32>
    %14 = math.exp %13 : vector<8x8xf32>
    %cst_11 = arith.constant dense<0.000000e+00> : vector<8xf32>
    %15 = vector.multi_reduction <add>, %14, %cst_11 [1] : vector<8x8xf32> to vector<8xf32>
    %16 = vector.shape_cast %15 : vector<8xf32> to vector<8x1xf32>
    %cst_12 = arith.constant 1.000000e+00 : f32
    %17 = vector.broadcast %cst_12 : f32 to vector<8x1xf32>
    %18 = arith.divf %17, %16 : vector<8x1xf32>
    %19 = vector.broadcast %18 : vector<8x1xf32> to vector<8x8xf32>
    %20 = arith.mulf %14, %19 : vector<8x8xf32>
    %c1_i32 = arith.constant 1 : i32
    %21 = tpu.dynamic_rotate %20 by %c1_i32 dim 1 : vector<8x8xf32>, i32 -> vector<8x8xf32>
    %c-1_i32 = arith.constant -1 : i32
    %22 = vector.broadcast %c-1_i32 : i32 to vector<8x8xi32>
    %23 = arith.addi %1, %22 : vector<8x8xi32>
    %c0_i32 = arith.constant 0 : i32
    %24 = vector.broadcast %c0_i32 : i32 to vector<8x8xi32>
    %25 = arith.cmpi sge, %23, %24 : vector<8x8xi32>
    %cst_13 = arith.constant 0.000000e+00 : f32
    %26 = vector.broadcast %cst_13 : f32 to vector<8x8xf32>
    %27 = arith.select %25, %21, %26 : vector<8x8xi1>, vector<8x8xf32>
    %28 = arith.addf %20, %27 : vector<8x8xf32>
    %c7_i32 = arith.constant 7 : i32
    %29 = tpu.dynamic_rotate %20 by %c7_i32 dim 1 : vector<8x8xf32>, i32 -> vector<8x8xf32>
    %c1_i32_14 = arith.constant 1 : i32
    %30 = vector.broadcast %c1_i32_14 : i32 to vector<8x8xi32>
    %31 = arith.addi %1, %30 : vector<8x8xi32>
    %c8_i32 = arith.constant 8 : i32
    %32 = vector.broadcast %c8_i32 : i32 to vector<8x8xi32>
    %33 = arith.cmpi slt, %31, %32 : vector<8x8xi32>
    %cst_15 = arith.constant 0.000000e+00 : f32
    %34 = vector.broadcast %cst_15 : f32 to vector<8x8xf32>
    %35 = arith.select %33, %29, %34 : vector<8x8xi1>, vector<8x8xf32>
    %36 = arith.addf %28, %35 : vector<8x8xf32>
    %cst_16 = arith.constant 0.333333343 : f32
    %37 = vector.broadcast %cst_16 : f32 to vector<8x8xf32>
    %38 = arith.mulf %36, %37 : vector<8x8xf32>
    %c0_17 = arith.constant 0 : index
    %c0_18 = arith.constant 0 : index
    %c0_19 = arith.constant 0 : index
    %c0_20 = arith.constant 0 : index
    %39 = vector.load %arg7[%c0_17, %c0_18, %c0_19, %c0_20] : memref<1x4x8x8xf32, #tpu.memory_space<vmem>>, vector<1x1x8x8xf32>
    %40 = vector.shape_cast %39 : vector<1x1x8x8xf32> to vector<8x8xf32>
    %41 = vector.shape_cast %38 : vector<8x8xf32> to vector<1x1x8x8xf32>
    tpu.vector_store %arg7[%c0_17, %c0_18, %c0_19, %c0_20], %41 {strides = array<i32>} : memref<1x4x8x8xf32, #tpu.memory_space<vmem>>, vector<1x1x8x8xf32>,
    %42 = arith.truncf %38 : vector<8x8xf32> to vector<8x8xbf16>
    %cst_21 = arith.constant dense<0.000000e+00> : vector<8x8xf32>
    %43 = tpu.matmul %42, %7, %cst_21 {dimension_numbers = #tpu.dot_dimension_numbers<[1], [0], [0], [1], [0, 0, 1, 1], [], []>} : vector<8x8xbf16>, vector<8x8xbf16>, vector<8x8xf32> -> vector<8x8xf32>
    %c0_22 = arith.constant 0 : index
    %c0_23 = arith.constant 0 : index
    %c8 = arith.constant 8 : index
    %44 = vector.load %arg3[%c0_22, %c0_23, %c8] : memref<1x8x32xbf16, #tpu.memory_space<vmem>>, vector<1x8x8xbf16>
    %45 = vector.shape_cast %44 : vector<1x8x8xbf16> to vector<8x8xbf16>
    %c0_24 = arith.constant 0 : index
    %c0_25 = arith.constant 0 : index
    %c8_26 = arith.constant 8 : index
    %46 = vector.load %arg4[%c0_24, %c0_25, %c8_26] : memref<1x8x32xbf16, #tpu.memory_space<vmem>>, vector<1x8x8xbf16>
    %47 = vector.shape_cast %46 : vector<1x8x8xbf16> to vector<8x8xbf16>
    %c0_27 = arith.constant 0 : index
    %c0_28 = arith.constant 0 : index
    %c8_29 = arith.constant 8 : index
    %48 = vector.load %arg5[%c0_27, %c0_28, %c8_29] : memref<1x8x32xbf16, #tpu.memory_space<vmem>>, vector<1x8x8xbf16>
    %49 = vector.shape_cast %48 : vector<1x8x8xbf16> to vector<8x8xbf16>
    "tpu.trace_start"() <{level = 10 : i32, message = "qd,kd->qk"}> : () -> ()
    %cst_30 = arith.constant dense<0.000000e+00> : vector<8x8xf32>
    %50 = tpu.matmul %45, %47, %cst_30 {dimension_numbers = #tpu.dot_dimension_numbers<[1], [1], [0], [0], [0, 0, 1, 0], [], []>} : vector<8x8xbf16>, vector<8x8xbf16>, vector<8x8xf32> -> vector<8x8xf32>
    "tpu.trace_stop"() : () -> ()
    %51 = arith.mulf %0, %50 : vector<8x8xf32>
    %cst_31 = arith.constant dense<0xFF800000> : vector<8xf32>
    %52 = vector.multi_reduction <maximumf>, %51, %cst_31 [1] : vector<8x8xf32> to vector<8xf32>
    %53 = vector.shape_cast %52 : vector<8xf32> to vector<8x1xf32>
    %54 = vector.broadcast %53 : vector<8x1xf32> to vector<8x8xf32>
    %55 = arith.subf %51, %54 : vector<8x8xf32>
    %56 = math.exp %55 : vector<8x8xf32>
    %cst_32 = arith.constant dense<0.000000e+00> : vector<8xf32>
    %57 = vector.multi_reduction <add>, %56, %cst_32 [1] : vector<8x8xf32> to vector<8xf32>
    %58 = vector.shape_cast %57 : vector<8xf32> to vector<8x1xf32>
    %cst_33 = arith.constant 1.000000e+00 : f32
    %59 = vector.broadcast %cst_33 : f32 to vector<8x1xf32>
    %60 = arith.divf %59, %58 : vector<8x1xf32>
    %61 = vector.broadcast %60 : vector<8x1xf32> to vector<8x8xf32>
    %62 = arith.mulf %56, %61 : vector<8x8xf32>
    %c1_i32_34 = arith.constant 1 : i32
    %63 = tpu.dynamic_rotate %62 by %c1_i32_34 dim 1 : vector<8x8xf32>, i32 -> vector<8x8xf32>
    %c-1_i32_35 = arith.constant -1 : i32
    %64 = vector.broadcast %c-1_i32_35 : i32 to vector<8x8xi32>
    %65 = arith.addi %1, %64 : vector<8x8xi32>
    %c0_i32_36 = arith.constant 0 : i32
    %66 = vector.broadcast %c0_i32_36 : i32 to vector<8x8xi32>
    %67 = arith.cmpi sge, %65, %66 : vector<8x8xi32>
    %cst_37 = arith.constant 0.000000e+00 : f32
    %68 = vector.broadcast %cst_37 : f32 to vector<8x8xf32>
    %69 = arith.select %67, %63, %68 : vector<8x8xi1>, vector<8x8xf32>
    %70 = arith.addf %62, %69 : vector<8x8xf32>
    %c7_i32_38 = arith.constant 7 : i32
    %71 = tpu.dynamic_rotate %62 by %c7_i32_38 dim 1 : vector<8x8xf32>, i32 -> vector<8x8xf32>
    %c1_i32_39 = arith.constant 1 : i32
    %72 = vector.broadcast %c1_i32_39 : i32 to vector<8x8xi32>
    %73 = arith.addi %1, %72 : vector<8x8xi32>
    %c8_i32_40 = arith.constant 8 : i32
    %74 = vector.broadcast %c8_i32_40 : i32 to vector<8x8xi32>
    %75 = arith.cmpi slt, %73, %74 : vector<8x8xi32>
    %cst_41 = arith.constant 0.000000e+00 : f32
    %76 = vector.broadcast %cst_41 : f32 to vector<8x8xf32>
    %77 = arith.select %75, %71, %76 : vector<8x8xi1>, vector<8x8xf32>
    %78 = arith.addf %70, %77 : vector<8x8xf32>
    %cst_42 = arith.constant 0.333333343 : f32
    %79 = vector.broadcast %cst_42 : f32 to vector<8x8xf32>
    %80 = arith.mulf %78, %79 : vector<8x8xf32>
    %c0_43 = arith.constant 0 : index
    %c1 = arith.constant 1 : index
    %c0_44 = arith.constant 0 : index
    %c0_45 = arith.constant 0 : index
    %81 = vector.load %arg7[%c0_43, %c1, %c0_44, %c0_45] : memref<1x4x8x8xf32, #tpu.memory_space<vmem>>, vector<1x1x8x8xf32>
    %82 = vector.shape_cast %81 : vector<1x1x8x8xf32> to vector<8x8xf32>
    %83 = vector.shape_cast %80 : vector<8x8xf32> to vector<1x1x8x8xf32>
    tpu.vector_store %arg7[%c0_43, %c1, %c0_44, %c0_45], %83 {strides = array<i32>} : memref<1x4x8x8xf32, #tpu.memory_space<vmem>>, vector<1x1x8x8xf32>,
    %84 = arith.truncf %80 : vector<8x8xf32> to vector<8x8xbf16>
    %cst_46 = arith.constant dense<0.000000e+00> : vector<8x8xf32>
    %85 = tpu.matmul %84, %49, %cst_46 {dimension_numbers = #tpu.dot_dimension_numbers<[1], [0], [0], [1], [0, 0, 1, 1], [], []>} : vector<8x8xbf16>, vector<8x8xbf16>, vector<8x8xf32> -> vector<8x8xf32>
    %c0_47 = arith.constant 0 : index
    %c0_48 = arith.constant 0 : index
    %c16 = arith.constant 16 : index
    %86 = vector.load %arg3[%c0_47, %c0_48, %c16] : memref<1x8x32xbf16, #tpu.memory_space<vmem>>, vector<1x8x8xbf16>
    %87 = vector.shape_cast %86 : vector<1x8x8xbf16> to vector<8x8xbf16>
    %c0_49 = arith.constant 0 : index
    %c0_50 = arith.constant 0 : index
    %c16_51 = arith.constant 16 : index
    %88 = vector.load %arg4[%c0_49, %c0_50, %c16_51] : memref<1x8x32xbf16, #tpu.memory_space<vmem>>, vector<1x8x8xbf16>
    %89 = vector.shape_cast %88 : vector<1x8x8xbf16> to vector<8x8xbf16>
    %c0_52 = arith.constant 0 : index
    %c0_53 = arith.constant 0 : index
    %c16_54 = arith.constant 16 : index
    %90 = vector.load %arg5[%c0_52, %c0_53, %c16_54] : memref<1x8x32xbf16, #tpu.memory_space<vmem>>, vector<1x8x8xbf16>
    %91 = vector.shape_cast %90 : vector<1x8x8xbf16> to vector<8x8xbf16>
    "tpu.trace_start"() <{level = 10 : i32, message = "qd,kd->qk"}> : () -> ()
    %cst_55 = arith.constant dense<0.000000e+00> : vector<8x8xf32>
    %92 = tpu.matmul %87, %89, %cst_55 {dimension_numbers = #tpu.dot_dimension_numbers<[1], [1], [0], [0], [0, 0, 1, 0], [], []>} : vector<8x8xbf16>, vector<8x8xbf16>, vector<8x8xf32> -> vector<8x8xf32>
    "tpu.trace_stop"() : () -> ()
    %93 = arith.mulf %0, %92 : vector<8x8xf32>
    %cst_56 = arith.constant dense<0xFF800000> : vector<8xf32>
    %94 = vector.multi_reduction <maximumf>, %93, %cst_56 [1] : vector<8x8xf32> to vector<8xf32>
    %95 = vector.shape_cast %94 : vector<8xf32> to vector<8x1xf32>
    %96 = vector.broadcast %95 : vector<8x1xf32> to vector<8x8xf32>
    %97 = arith.subf %93, %96 : vector<8x8xf32>
    %98 = math.exp %97 : vector<8x8xf32>
    %cst_57 = arith.constant dense<0.000000e+00> : vector<8xf32>
    %99 = vector.multi_reduction <add>, %98, %cst_57 [1] : vector<8x8xf32> to vector<8xf32>
    %100 = vector.shape_cast %99 : vector<8xf32> to vector<8x1xf32>
    %cst_58 = arith.constant 1.000000e+00 : f32
    %101 = vector.broadcast %cst_58 : f32 to vector<8x1xf32>
    %102 = arith.divf %101, %100 : vector<8x1xf32>
    %103 = vector.broadcast %102 : vector<8x1xf32> to vector<8x8xf32>
    %104 = arith.mulf %98, %103 : vector<8x8xf32>
    %c1_i32_59 = arith.constant 1 : i32
    %105 = tpu.dynamic_rotate %104 by %c1_i32_59 dim 1 : vector<8x8xf32>, i32 -> vector<8x8xf32>
    %c-1_i32_60 = arith.constant -1 : i32
    %106 = vector.broadcast %c-1_i32_60 : i32 to vector<8x8xi32>
    %107 = arith.addi %1, %106 : vector<8x8xi32>
    %c0_i32_61 = arith.constant 0 : i32
    %108 = vector.broadcast %c0_i32_61 : i32 to vector<8x8xi32>
    %109 = arith.cmpi sge, %107, %108 : vector<8x8xi32>
    %cst_62 = arith.constant 0.000000e+00 : f32
    %110 = vector.broadcast %cst_62 : f32 to vector<8x8xf32>
    %111 = arith.select %109, %105, %110 : vector<8x8xi1>, vector<8x8xf32>
    %112 = arith.addf %104, %111 : vector<8x8xf32>
    %c7_i32_63 = arith.constant 7 : i32
    %113 = tpu.dynamic_rotate %104 by %c7_i32_63 dim 1 : vector<8x8xf32>, i32 -> vector<8x8xf32>
    %c1_i32_64 = arith.constant 1 : i32
    %114 = vector.broadcast %c1_i32_64 : i32 to vector<8x8xi32>
    %115 = arith.addi %1, %114 : vector<8x8xi32>
    %c8_i32_65 = arith.constant 8 : i32
    %116 = vector.broadcast %c8_i32_65 : i32 to vector<8x8xi32>
    %117 = arith.cmpi slt, %115, %116 : vector<8x8xi32>
    %cst_66 = arith.constant 0.000000e+00 : f32
    %118 = vector.broadcast %cst_66 : f32 to vector<8x8xf32>
    %119 = arith.select %117, %113, %118 : vector<8x8xi1>, vector<8x8xf32>
    %120 = arith.addf %112, %119 : vector<8x8xf32>
    %cst_67 = arith.constant 0.333333343 : f32
    %121 = vector.broadcast %cst_67 : f32 to vector<8x8xf32>
    %122 = arith.mulf %120, %121 : vector<8x8xf32>
    %c0_68 = arith.constant 0 : index
    %c2 = arith.constant 2 : index
    %c0_69 = arith.constant 0 : index
    %c0_70 = arith.constant 0 : index
    %123 = vector.load %arg7[%c0_68, %c2, %c0_69, %c0_70] : memref<1x4x8x8xf32, #tpu.memory_space<vmem>>, vector<1x1x8x8xf32>
    %124 = vector.shape_cast %123 : vector<1x1x8x8xf32> to vector<8x8xf32>
    %125 = vector.shape_cast %122 : vector<8x8xf32> to vector<1x1x8x8xf32>
    tpu.vector_store %arg7[%c0_68, %c2, %c0_69, %c0_70], %125 {strides = array<i32>} : memref<1x4x8x8xf32, #tpu.memory_space<vmem>>, vector<1x1x8x8xf32>,
    %126 = arith.truncf %122 : vector<8x8xf32> to vector<8x8xbf16>
    %cst_71 = arith.constant dense<0.000000e+00> : vector<8x8xf32>
    %127 = tpu.matmul %126, %91, %cst_71 {dimension_numbers = #tpu.dot_dimension_numbers<[1], [0], [0], [1], [0, 0, 1, 1], [], []>} : vector<8x8xbf16>, vector<8x8xbf16>, vector<8x8xf32> -> vector<8x8xf32>
    %c0_72 = arith.constant 0 : index
    %c0_73 = arith.constant 0 : index
    %c24 = arith.constant 24 : index
    %128 = vector.load %arg3[%c0_72, %c0_73, %c24] : memref<1x8x32xbf16, #tpu.memory_space<vmem>>, vector<1x8x8xbf16>
    %129 = vector.shape_cast %128 : vector<1x8x8xbf16> to vector<8x8xbf16>
    %c0_74 = arith.constant 0 : index
    %c0_75 = arith.constant 0 : index
    %c24_76 = arith.constant 24 : index
    %130 = vector.load %arg4[%c0_74, %c0_75, %c24_76] : memref<1x8x32xbf16, #tpu.memory_space<vmem>>, vector<1x8x8xbf16>
    %131 = vector.shape_cast %130 : vector<1x8x8xbf16> to vector<8x8xbf16>
    %c0_77 = arith.constant 0 : index
    %c0_78 = arith.constant 0 : index
    %c24_79 = arith.constant 24 : index
    %132 = vector.load %arg5[%c0_77, %c0_78, %c24_79] : memref<1x8x32xbf16, #tpu.memory_space<vmem>>, vector<1x8x8xbf16>
    %133 = vector.shape_cast %132 : vector<1x8x8xbf16> to vector<8x8xbf16>
    "tpu.trace_start"() <{level = 10 : i32, message = "qd,kd->qk"}> : () -> ()
    %cst_80 = arith.constant dense<0.000000e+00> : vector<8x8xf32>
    %134 = tpu.matmul %129, %131, %cst_80 {dimension_numbers = #tpu.dot_dimension_numbers<[1], [1], [0], [0], [0, 0, 1, 0], [], []>} : vector<8x8xbf16>, vector<8x8xbf16>, vector<8x8xf32> -> vector<8x8xf32>
    "tpu.trace_stop"() : () -> ()
    %135 = arith.mulf %0, %134 : vector<8x8xf32>
    %cst_81 = arith.constant dense<0xFF800000> : vector<8xf32>
    %136 = vector.multi_reduction <maximumf>, %135, %cst_81 [1] : vector<8x8xf32> to vector<8xf32>
    %137 = vector.shape_cast %136 : vector<8xf32> to vector<8x1xf32>
    %138 = vector.broadcast %137 : vector<8x1xf32> to vector<8x8xf32>
    %139 = arith.subf %135, %138 : vector<8x8xf32>
    %140 = math.exp %139 : vector<8x8xf32>
    %cst_82 = arith.constant dense<0.000000e+00> : vector<8xf32>
    %141 = vector.multi_reduction <add>, %140, %cst_82 [1] : vector<8x8xf32> to vector<8xf32>
    %142 = vector.shape_cast %141 : vector<8xf32> to vector<8x1xf32>
    %cst_83 = arith.constant 1.000000e+00 : f32
    %143 = vector.broadcast %cst_83 : f32 to vector<8x1xf32>
    %144 = arith.divf %143, %142 : vector<8x1xf32>
    %145 = vector.broadcast %144 : vector<8x1xf32> to vector<8x8xf32>
    %146 = arith.mulf %140, %145 : vector<8x8xf32>
    %c1_i32_84 = arith.constant 1 : i32
    %147 = tpu.dynamic_rotate %146 by %c1_i32_84 dim 1 : vector<8x8xf32>, i32 -> vector<8x8xf32>
    %c-1_i32_85 = arith.constant -1 : i32
    %148 = vector.broadcast %c-1_i32_85 : i32 to vector<8x8xi32>
    %149 = arith.addi %1, %148 : vector<8x8xi32>
    %c0_i32_86 = arith.constant 0 : i32
    %150 = vector.broadcast %c0_i32_86 : i32 to vector<8x8xi32>
    %151 = arith.cmpi sge, %149, %150 : vector<8x8xi32>
    %cst_87 = arith.constant 0.000000e+00 : f32
    %152 = vector.broadcast %cst_87 : f32 to vector<8x8xf32>
    %153 = arith.select %151, %147, %152 : vector<8x8xi1>, vector<8x8xf32>
    %154 = arith.addf %146, %153 : vector<8x8xf32>
    %c7_i32_88 = arith.constant 7 : i32
    %155 = tpu.dynamic_rotate %146 by %c7_i32_88 dim 1 : vector<8x8xf32>, i32 -> vector<8x8xf32>
    %c1_i32_89 = arith.constant 1 : i32
    %156 = vector.broadcast %c1_i32_89 : i32 to vector<8x8xi32>
    %157 = arith.addi %1, %156 : vector<8x8xi32>
    %c8_i32_90 = arith.constant 8 : i32
    %158 = vector.broadcast %c8_i32_90 : i32 to vector<8x8xi32>
    %159 = arith.cmpi slt, %157, %158 : vector<8x8xi32>
    %cst_91 = arith.constant 0.000000e+00 : f32
    %160 = vector.broadcast %cst_91 : f32 to vector<8x8xf32>
    %161 = arith.select %159, %155, %160 : vector<8x8xi1>, vector<8x8xf32>
    %162 = arith.addf %154, %161 : vector<8x8xf32>
    %cst_92 = arith.constant 0.333333343 : f32
    %163 = vector.broadcast %cst_92 : f32 to vector<8x8xf32>
    %164 = arith.mulf %162, %163 : vector<8x8xf32>
    %c0_93 = arith.constant 0 : index
    %c3 = arith.constant 3 : index
    %c0_94 = arith.constant 0 : index
    %c0_95 = arith.constant 0 : index
    %165 = vector.load %arg7[%c0_93, %c3, %c0_94, %c0_95] : memref<1x4x8x8xf32, #tpu.memory_space<vmem>>, vector<1x1x8x8xf32>
    %166 = vector.shape_cast %165 : vector<1x1x8x8xf32> to vector<8x8xf32>
    %167 = vector.shape_cast %164 : vector<8x8xf32> to vector<1x1x8x8xf32>
    tpu.vector_store %arg7[%c0_93, %c3, %c0_94, %c0_95], %167 {strides = array<i32>} : memref<1x4x8x8xf32, #tpu.memory_space<vmem>>, vector<1x1x8x8xf32>,
    %168 = arith.truncf %164 : vector<8x8xf32> to vector<8x8xbf16>
    %cst_96 = arith.constant dense<0.000000e+00> : vector<8x8xf32>
    %169 = tpu.matmul %168, %133, %cst_96 {dimension_numbers = #tpu.dot_dimension_numbers<[1], [0], [0], [1], [0, 0, 1, 1], [], []>} : vector<8x8xbf16>, vector<8x8xbf16>, vector<8x8xf32> -> vector<8x8xf32>
    %170 = tpu.concatenate %43, %85, %127, %169 in 1 : vector<8x8xf32>, vector<8x8xf32>, vector<8x8xf32>, vector<8x8xf32> -> vector<8x32xf32>
    %171 = arith.truncf %170 : vector<8x32xf32> to vector<8x32xbf16>
    %c0_97 = arith.constant 0 : index
    %c0_98 = arith.constant 0 : index
    %c0_99 = arith.constant 0 : index
    %172 = vector.load %arg6[%c0_97, %c0_98, %c0_99] : memref<1x8x32xbf16, #tpu.memory_space<vmem>>, vector<1x8x32xbf16>
    %173 = vector.shape_cast %172 : vector<1x8x32xbf16> to vector<8x32xbf16>
    %174 = vector.shape_cast %171 : vector<8x32xbf16> to vector<1x8x32xbf16>
    tpu.vector_store %arg6[%c0_97, %c0_98, %c0_99], %174 {strides = array<i32>} : memref<1x8x32xbf16, #tpu.memory_space<vmem>>, vector<1x8x32xbf16>,
    return
  }
  func.func @transform_0(%arg0: i32, %arg1: i32) -> (i32, i32) {
    %c0_i32 = arith.constant 0 : i32
    %c0_i32_0 = arith.constant 0 : i32
    return %arg1, %c0_i32 : i32, i32
  }
  func.func @transform_1(%arg0: i32, %arg1: i32) -> (i32, i32, i32) {
    %c0_i32 = arith.constant 0 : i32
    %c0_i32_0 = arith.constant 0 : i32
    return %arg0, %arg1, %c0_i32 : i32, i32, i32
  }
  func.func @transform_2(%arg0: i32, %arg1: i32) -> (i32, i32, i32) {
    %c0_i32 = arith.constant 0 : i32
    %c0_i32_0 = arith.constant 0 : i32
    %c0_i32_1 = arith.constant 0 : i32
    return %arg0, %c0_i32, %c0_i32_0 : i32, i32, i32
  }
  func.func @transform_3(%arg0: i32, %arg1: i32) -> (i32, i32, i32) {
    %c0_i32 = arith.constant 0 : i32
    %c0_i32_0 = arith.constant 0 : i32
    %c0_i32_1 = arith.constant 0 : i32
    return %arg0, %c0_i32, %c0_i32_0 : i32, i32, i32
  }
  func.func @transform_4(%arg0: i32, %arg1: i32) -> (i32, i32, i32) {
    %c0_i32 = arith.constant 0 : i32
    %c0_i32_0 = arith.constant 0 : i32
    return %arg0, %arg1, %c0_i32 : i32, i32, i32
  }
  func.func @transform_5(%arg0: i32, %arg1: i32) -> (i32, i32, i32, i32) {
    %c0_i32 = arith.constant 0 : i32
    %c0_i32_0 = arith.constant 0 : i32
    %c0_i32_1 = arith.constant 0 : i32
    return %arg0, %c0_i32, %arg1, %c0_i32_0 : i32, i32, i32, i32
  }
}

module attributes {stable_mosaic.version = 11 : i64} {
  func.func @_fc_res_ln_kernel(%arg0: i32, %arg1: memref<16x32xbf16, #tpu.memory_space<vmem>>, %arg2: memref<32x32xbf16, #tpu.memory_space<vmem>>, %arg3: memref<16x32xf32, #tpu.memory_space<vmem>>, %arg4: memref<1x32xf32, #tpu.memory_space<vmem>>, %arg5: memref<1x32xf32, #tpu.memory_space<vmem>>, %arg6: memref<16x32xf32, #tpu.memory_space<vmem>>) attributes {dimension_semantics = [#tpu.dimension_semantics<parallel>], iteration_bounds = array<i64: 1>, scalar_prefetch = 0 : i64, scratch_operands = 0 : i64, tpu.core_type = #tpu.core_type<tc>, window_params = [{transform_indices = @transform_0, window_bounds = array<i64: 16, 32>}, {pipeline_mode = #tpu.pipeline_mode<synchronous>, transform_indices = @transform_1, window_bounds = array<i64: 32, 32>}, {transform_indices = @transform_2, window_bounds = array<i64: 16, 32>}, {pipeline_mode = #tpu.pipeline_mode<synchronous>, transform_indices = @transform_3, window_bounds = array<i64: 1, 32>}, {pipeline_mode = #tpu.pipeline_mode<synchronous>, transform_indices = @transform_4, window_bounds = array<i64: 1, 32>}, {transform_indices = @transform_5, window_bounds = array<i64: 16, 32>}]} {
    %c0 = arith.constant 0 : index
    %c0_0 = arith.constant 0 : index
    %0 = vector.load %arg3[%c0, %c0_0] : memref<16x32xf32, #tpu.memory_space<vmem>>, vector<16x32xf32>
    %c0_1 = arith.constant 0 : index
    %c0_2 = arith.constant 0 : index
    %1 = vector.load %arg1[%c0_1, %c0_2] : memref<16x32xbf16, #tpu.memory_space<vmem>>, vector<16x32xbf16>
    %c0_3 = arith.constant 0 : index
    %c0_4 = arith.constant 0 : index
    %2 = vector.load %arg2[%c0_3, %c0_4] : memref<32x32xbf16, #tpu.memory_space<vmem>>, vector<32x32xbf16>
    %cst = arith.constant dense<0.000000e+00> : vector<16x32xf32>
    %3 = tpu.matmul %1, %2, %cst {dimension_numbers = #tpu.dot_dimension_numbers<[1], [0], [0], [1], [0, 0, 1, 1], [], []>} : vector<16x32xbf16>, vector<32x32xbf16>, vector<16x32xf32> -> vector<16x32xf32>
    %4 = arith.addf %0, %3 : vector<16x32xf32>
    %cst_5 = arith.constant dense<0.000000e+00> : vector<16xf32>
    %5 = vector.multi_reduction <add>, %4, %cst_5 [1] : vector<16x32xf32> to vector<16xf32>
    %6 = vector.shape_cast %5 : vector<16xf32> to vector<16x1xf32>
    %cst_6 = arith.constant 3.200000e+01 : f32
    %7 = vector.broadcast %cst_6 : f32 to vector<16x1xf32>
    %8 = arith.divf %6, %7 : vector<16x1xf32>
    %9 = vector.broadcast %8 : vector<16x1xf32> to vector<16x32xf32>
    %10 = arith.subf %4, %9 : vector<16x32xf32>
    %11 = arith.mulf %10, %10 : vector<16x32xf32>
    %cst_7 = arith.constant dense<0.000000e+00> : vector<16xf32>
    %12 = vector.multi_reduction <add>, %11, %cst_7 [1] : vector<16x32xf32> to vector<16xf32>
    %13 = vector.shape_cast %12 : vector<16xf32> to vector<16x1xf32>
    %cst_8 = arith.constant 3.200000e+01 : f32
    %14 = vector.broadcast %cst_8 : f32 to vector<16x1xf32>
    %15 = arith.divf %13, %14 : vector<16x1xf32>
    %16 = vector.broadcast %8 : vector<16x1xf32> to vector<16x32xf32>
    %17 = arith.subf %4, %16 : vector<16x32xf32>
    %cst_9 = arith.constant 9.99999997E-7 : f32
    %18 = vector.broadcast %cst_9 : f32 to vector<16x1xf32>
    %19 = arith.addf %15, %18 : vector<16x1xf32>
    %20 = math.rsqrt %19 : vector<16x1xf32>
    %21 = vector.broadcast %20 : vector<16x1xf32> to vector<16x32xf32>
    %22 = arith.mulf %17, %21 : vector<16x32xf32>
    %c0_10 = arith.constant 0 : index
    %c0_11 = arith.constant 0 : index
    %23 = vector.load %arg4[%c0_10, %c0_11] : memref<1x32xf32, #tpu.memory_space<vmem>>, vector<1x32xf32>
    %24 = vector.broadcast %23 : vector<1x32xf32> to vector<16x32xf32>
    %25 = arith.mulf %22, %24 : vector<16x32xf32>
    %c0_12 = arith.constant 0 : index
    %c0_13 = arith.constant 0 : index
    %26 = vector.load %arg5[%c0_12, %c0_13] : memref<1x32xf32, #tpu.memory_space<vmem>>, vector<1x32xf32>
    %27 = vector.broadcast %26 : vector<1x32xf32> to vector<16x32xf32>
    %28 = arith.addf %25, %27 : vector<16x32xf32>
    %c0_14 = arith.constant 0 : index
    %c0_15 = arith.constant 0 : index
    %29 = vector.load %arg6[%c0_14, %c0_15] : memref<16x32xf32, #tpu.memory_space<vmem>>, vector<16x32xf32>
    tpu.vector_store %arg6[%c0_14, %c0_15], %28 {strides = array<i32>} : memref<16x32xf32, #tpu.memory_space<vmem>>, vector<16x32xf32>,
    return
  }
  func.func @transform_0(%arg0: i32) -> (i32, i32) {
    %c0_i32 = arith.constant 0 : i32
    %c0_i32_0 = arith.constant 0 : i32
    return %arg0, %c0_i32 : i32, i32
  }
  func.func @transform_1(%arg0: i32) -> (i32, i32) {
    %c0_i32 = arith.constant 0 : i32
    %c0_i32_0 = arith.constant 0 : i32
    %c0_i32_1 = arith.constant 0 : i32
    return %c0_i32, %c0_i32_0 : i32, i32
  }
  func.func @transform_2(%arg0: i32) -> (i32, i32) {
    %c0_i32 = arith.constant 0 : i32
    %c0_i32_0 = arith.constant 0 : i32
    return %arg0, %c0_i32 : i32, i32
  }
  func.func @transform_3(%arg0: i32) -> (i32, i32) {
    %c0_i32 = arith.constant 0 : i32
    %c0_i32_0 = arith.constant 0 : i32
    %c0_i32_1 = arith.constant 0 : i32
    return %c0_i32, %c0_i32_0 : i32, i32
  }
  func.func @transform_4(%arg0: i32) -> (i32, i32) {
    %c0_i32 = arith.constant 0 : i32
    %c0_i32_0 = arith.constant 0 : i32
    %c0_i32_1 = arith.constant 0 : i32
    return %c0_i32, %c0_i32_0 : i32, i32
  }
  func.func @transform_5(%arg0: i32) -> (i32, i32) {
    %c0_i32 = arith.constant 0 : i32
    %c0_i32_0 = arith.constant 0 : i32
    return %arg0, %c0_i32 : i32, i32
  }
}

module attributes {stable_mosaic.version = 11 : i64} {
  func.func @_proj_kernel(%arg0: i32, %arg1: memref<16x32xf32, #tpu.memory_space<vmem>>, %arg2: memref<32x32xbf16, #tpu.memory_space<vmem>>, %arg3: memref<16x32xbf16, #tpu.memory_space<vmem>>) attributes {dimension_semantics = [#tpu.dimension_semantics<parallel>], iteration_bounds = array<i64: 1>, scalar_prefetch = 0 : i64, scratch_operands = 0 : i64, tpu.core_type = #tpu.core_type<tc>, window_params = [{transform_indices = @transform_0, window_bounds = array<i64: 16, 32>}, {pipeline_mode = #tpu.pipeline_mode<synchronous>, transform_indices = @transform_1, window_bounds = array<i64: 32, 32>}, {transform_indices = @transform_2, window_bounds = array<i64: 16, 32>}]} {
    %c0 = arith.constant 0 : index
    %c0_0 = arith.constant 0 : index
    %0 = vector.load %arg1[%c0, %c0_0] : memref<16x32xf32, #tpu.memory_space<vmem>>, vector<16x32xf32>
    %1 = arith.truncf %0 : vector<16x32xf32> to vector<16x32xbf16>
    %c0_1 = arith.constant 0 : index
    %c0_2 = arith.constant 0 : index
    %2 = vector.load %arg2[%c0_1, %c0_2] : memref<32x32xbf16, #tpu.memory_space<vmem>>, vector<32x32xbf16>
    %cst = arith.constant dense<0.000000e+00> : vector<16x32xf32>
    %3 = tpu.matmul %1, %2, %cst {dimension_numbers = #tpu.dot_dimension_numbers<[1], [0], [0], [1], [0, 0, 1, 1], [], []>} : vector<16x32xbf16>, vector<32x32xbf16>, vector<16x32xf32> -> vector<16x32xf32>
    %4 = arith.truncf %3 : vector<16x32xf32> to vector<16x32xbf16>
    %c0_3 = arith.constant 0 : index
    %c0_4 = arith.constant 0 : index
    %5 = vector.load %arg3[%c0_3, %c0_4] : memref<16x32xbf16, #tpu.memory_space<vmem>>, vector<16x32xbf16>
    tpu.vector_store %arg3[%c0_3, %c0_4], %4 {strides = array<i32>} : memref<16x32xbf16, #tpu.memory_space<vmem>>, vector<16x32xbf16>,
    return
  }
  func.func @transform_0(%arg0: i32) -> (i32, i32) {
    %c0_i32 = arith.constant 0 : i32
    %c0_i32_0 = arith.constant 0 : i32
    return %arg0, %c0_i32 : i32, i32
  }
  func.func @transform_1(%arg0: i32) -> (i32, i32) {
    %c0_i32 = arith.constant 0 : i32
    %c0_i32_0 = arith.constant 0 : i32
    %c0_i32_1 = arith.constant 0 : i32
    return %c0_i32, %c0_i32_0 : i32, i32
  }
  func.func @transform_2(%arg0: i32) -> (i32, i32) {
    %c0_i32 = arith.constant 0 : i32
    %c0_i32_0 = arith.constant 0 : i32
    return %arg0, %c0_i32 : i32, i32
  }
}

module attributes {stable_mosaic.version = 11 : i64} {
  func.func @_proj_kernel(%arg0: i32, %arg1: memref<16x32xf32, #tpu.memory_space<vmem>>, %arg2: memref<32x64xbf16, #tpu.memory_space<vmem>>, %arg3: memref<16x32xbf16, #tpu.memory_space<vmem>>, %arg4: memref<16x32xbf16, #tpu.memory_space<vmem>>) attributes {dimension_semantics = [#tpu.dimension_semantics<parallel>], iteration_bounds = array<i64: 1>, scalar_prefetch = 0 : i64, scratch_operands = 0 : i64, tpu.core_type = #tpu.core_type<tc>, window_params = [{transform_indices = @transform_0, window_bounds = array<i64: 16, 32>}, {pipeline_mode = #tpu.pipeline_mode<synchronous>, transform_indices = @transform_1, window_bounds = array<i64: 32, 64>}, {transform_indices = @transform_2, window_bounds = array<i64: 16, 32>}, {transform_indices = @transform_3, window_bounds = array<i64: 16, 32>}]} {
    %c0 = arith.constant 0 : index
    %c0_0 = arith.constant 0 : index
    %0 = vector.load %arg1[%c0, %c0_0] : memref<16x32xf32, #tpu.memory_space<vmem>>, vector<16x32xf32>
    %1 = arith.truncf %0 : vector<16x32xf32> to vector<16x32xbf16>
    %c0_1 = arith.constant 0 : index
    %c0_2 = arith.constant 0 : index
    %2 = vector.load %arg2[%c0_1, %c0_2] : memref<32x64xbf16, #tpu.memory_space<vmem>>, vector<32x64xbf16>
    %cst = arith.constant dense<0.000000e+00> : vector<16x64xf32>
    %3 = tpu.matmul %1, %2, %cst {dimension_numbers = #tpu.dot_dimension_numbers<[1], [0], [0], [1], [0, 0, 1, 1], [], []>} : vector<16x32xbf16>, vector<32x64xbf16>, vector<16x64xf32> -> vector<16x64xf32>
    %4 = vector.extract_strided_slice %3 {offsets = [0, 0], sizes = [16, 32], strides = [1, 1]} : vector<16x64xf32> to vector<16x32xf32>
    %5 = arith.truncf %4 : vector<16x32xf32> to vector<16x32xbf16>
    %c0_3 = arith.constant 0 : index
    %c0_4 = arith.constant 0 : index
    %6 = vector.load %arg3[%c0_3, %c0_4] : memref<16x32xbf16, #tpu.memory_space<vmem>>, vector<16x32xbf16>
    tpu.vector_store %arg3[%c0_3, %c0_4], %5 {strides = array<i32>} : memref<16x32xbf16, #tpu.memory_space<vmem>>, vector<16x32xbf16>,
    %7 = vector.extract_strided_slice %3 {offsets = [0, 32], sizes = [16, 32], strides = [1, 1]} : vector<16x64xf32> to vector<16x32xf32>
    %8 = arith.truncf %7 : vector<16x32xf32> to vector<16x32xbf16>
    %c0_5 = arith.constant 0 : index
    %c0_6 = arith.constant 0 : index
    %9 = vector.load %arg4[%c0_5, %c0_6] : memref<16x32xbf16, #tpu.memory_space<vmem>>, vector<16x32xbf16>
    tpu.vector_store %arg4[%c0_5, %c0_6], %8 {strides = array<i32>} : memref<16x32xbf16, #tpu.memory_space<vmem>>, vector<16x32xbf16>,
    return
  }
  func.func @transform_0(%arg0: i32) -> (i32, i32) {
    %c0_i32 = arith.constant 0 : i32
    %c0_i32_0 = arith.constant 0 : i32
    return %arg0, %c0_i32 : i32, i32
  }
  func.func @transform_1(%arg0: i32) -> (i32, i32) {
    %c0_i32 = arith.constant 0 : i32
    %c0_i32_0 = arith.constant 0 : i32
    %c0_i32_1 = arith.constant 0 : i32
    return %c0_i32, %c0_i32_0 : i32, i32
  }
  func.func @transform_2(%arg0: i32) -> (i32, i32) {
    %c0_i32 = arith.constant 0 : i32
    %c0_i32_0 = arith.constant 0 : i32
    return %arg0, %c0_i32 : i32, i32
  }
  func.func @transform_3(%arg0: i32) -> (i32, i32) {
    %c0_i32 = arith.constant 0 : i32
    %c0_i32_0 = arith.constant 0 : i32
    return %arg0, %c0_i32 : i32, i32
  }
}

module attributes {stable_mosaic.version = 11 : i64} {
  func.func @_fc_res_ln_kernel(%arg0: i32, %arg1: memref<16x32xbf16, #tpu.memory_space<vmem>>, %arg2: memref<32x32xbf16, #tpu.memory_space<vmem>>, %arg3: memref<16x32xf32, #tpu.memory_space<vmem>>, %arg4: memref<1x32xf32, #tpu.memory_space<vmem>>, %arg5: memref<1x32xf32, #tpu.memory_space<vmem>>, %arg6: memref<16x32xf32, #tpu.memory_space<vmem>>) attributes {dimension_semantics = [#tpu.dimension_semantics<parallel>], iteration_bounds = array<i64: 1>, scalar_prefetch = 0 : i64, scratch_operands = 0 : i64, tpu.core_type = #tpu.core_type<tc>, window_params = [{transform_indices = @transform_0, window_bounds = array<i64: 16, 32>}, {pipeline_mode = #tpu.pipeline_mode<synchronous>, transform_indices = @transform_1, window_bounds = array<i64: 32, 32>}, {transform_indices = @transform_2, window_bounds = array<i64: 16, 32>}, {pipeline_mode = #tpu.pipeline_mode<synchronous>, transform_indices = @transform_3, window_bounds = array<i64: 1, 32>}, {pipeline_mode = #tpu.pipeline_mode<synchronous>, transform_indices = @transform_4, window_bounds = array<i64: 1, 32>}, {transform_indices = @transform_5, window_bounds = array<i64: 16, 32>}]} {
    %c0 = arith.constant 0 : index
    %c0_0 = arith.constant 0 : index
    %0 = vector.load %arg3[%c0, %c0_0] : memref<16x32xf32, #tpu.memory_space<vmem>>, vector<16x32xf32>
    %c0_1 = arith.constant 0 : index
    %c0_2 = arith.constant 0 : index
    %1 = vector.load %arg1[%c0_1, %c0_2] : memref<16x32xbf16, #tpu.memory_space<vmem>>, vector<16x32xbf16>
    %c0_3 = arith.constant 0 : index
    %c0_4 = arith.constant 0 : index
    %2 = vector.load %arg2[%c0_3, %c0_4] : memref<32x32xbf16, #tpu.memory_space<vmem>>, vector<32x32xbf16>
    %cst = arith.constant dense<0.000000e+00> : vector<16x32xf32>
    %3 = tpu.matmul %1, %2, %cst {dimension_numbers = #tpu.dot_dimension_numbers<[1], [0], [0], [1], [0, 0, 1, 1], [], []>} : vector<16x32xbf16>, vector<32x32xbf16>, vector<16x32xf32> -> vector<16x32xf32>
    %4 = arith.addf %0, %3 : vector<16x32xf32>
    %cst_5 = arith.constant dense<0.000000e+00> : vector<16xf32>
    %5 = vector.multi_reduction <add>, %4, %cst_5 [1] : vector<16x32xf32> to vector<16xf32>
    %6 = vector.shape_cast %5 : vector<16xf32> to vector<16x1xf32>
    %cst_6 = arith.constant 3.200000e+01 : f32
    %7 = vector.broadcast %cst_6 : f32 to vector<16x1xf32>
    %8 = arith.divf %6, %7 : vector<16x1xf32>
    %9 = vector.broadcast %8 : vector<16x1xf32> to vector<16x32xf32>
    %10 = arith.subf %4, %9 : vector<16x32xf32>
    %11 = arith.mulf %10, %10 : vector<16x32xf32>
    %cst_7 = arith.constant dense<0.000000e+00> : vector<16xf32>
    %12 = vector.multi_reduction <add>, %11, %cst_7 [1] : vector<16x32xf32> to vector<16xf32>
    %13 = vector.shape_cast %12 : vector<16xf32> to vector<16x1xf32>
    %cst_8 = arith.constant 3.200000e+01 : f32
    %14 = vector.broadcast %cst_8 : f32 to vector<16x1xf32>
    %15 = arith.divf %13, %14 : vector<16x1xf32>
    %16 = vector.broadcast %8 : vector<16x1xf32> to vector<16x32xf32>
    %17 = arith.subf %4, %16 : vector<16x32xf32>
    %cst_9 = arith.constant 9.99999997E-7 : f32
    %18 = vector.broadcast %cst_9 : f32 to vector<16x1xf32>
    %19 = arith.addf %15, %18 : vector<16x1xf32>
    %20 = math.rsqrt %19 : vector<16x1xf32>
    %21 = vector.broadcast %20 : vector<16x1xf32> to vector<16x32xf32>
    %22 = arith.mulf %17, %21 : vector<16x32xf32>
    %c0_10 = arith.constant 0 : index
    %c0_11 = arith.constant 0 : index
    %23 = vector.load %arg4[%c0_10, %c0_11] : memref<1x32xf32, #tpu.memory_space<vmem>>, vector<1x32xf32>
    %24 = vector.broadcast %23 : vector<1x32xf32> to vector<16x32xf32>
    %25 = arith.mulf %22, %24 : vector<16x32xf32>
    %c0_12 = arith.constant 0 : index
    %c0_13 = arith.constant 0 : index
    %26 = vector.load %arg5[%c0_12, %c0_13] : memref<1x32xf32, #tpu.memory_space<vmem>>, vector<1x32xf32>
    %27 = vector.broadcast %26 : vector<1x32xf32> to vector<16x32xf32>
    %28 = arith.addf %25, %27 : vector<16x32xf32>
    %c0_14 = arith.constant 0 : index
    %c0_15 = arith.constant 0 : index
    %29 = vector.load %arg6[%c0_14, %c0_15] : memref<16x32xf32, #tpu.memory_space<vmem>>, vector<16x32xf32>
    tpu.vector_store %arg6[%c0_14, %c0_15], %28 {strides = array<i32>} : memref<16x32xf32, #tpu.memory_space<vmem>>, vector<16x32xf32>,
    return
  }
  func.func @transform_0(%arg0: i32) -> (i32, i32) {
    %c0_i32 = arith.constant 0 : i32
    %c0_i32_0 = arith.constant 0 : i32
    return %arg0, %c0_i32 : i32, i32
  }
  func.func @transform_1(%arg0: i32) -> (i32, i32) {
    %c0_i32 = arith.constant 0 : i32
    %c0_i32_0 = arith.constant 0 : i32
    %c0_i32_1 = arith.constant 0 : i32
    return %c0_i32, %c0_i32_0 : i32, i32
  }
  func.func @transform_2(%arg0: i32) -> (i32, i32) {
    %c0_i32 = arith.constant 0 : i32
    %c0_i32_0 = arith.constant 0 : i32
    return %arg0, %c0_i32 : i32, i32
  }
  func.func @transform_3(%arg0: i32) -> (i32, i32) {
    %c0_i32 = arith.constant 0 : i32
    %c0_i32_0 = arith.constant 0 : i32
    %c0_i32_1 = arith.constant 0 : i32
    return %c0_i32, %c0_i32_0 : i32, i32
  }
  func.func @transform_4(%arg0: i32) -> (i32, i32) {
    %c0_i32 = arith.constant 0 : i32
    %c0_i32_0 = arith.constant 0 : i32
    %c0_i32_1 = arith.constant 0 : i32
    return %c0_i32, %c0_i32_0 : i32, i32
  }
  func.func @transform_5(%arg0: i32) -> (i32, i32) {
    %c0_i32 = arith.constant 0 : i32
    %c0_i32_0 = arith.constant 0 : i32
    return %arg0, %c0_i32 : i32, i32
  }
}

module attributes {stable_mosaic.version = 11 : i64} {
  func.func @_ffn_kernel(%arg0: i32, %arg1: memref<16x32xf32, #tpu.memory_space<vmem>>, %arg2: memref<32x64xbf16, #tpu.memory_space<vmem>>, %arg3: memref<1x64xf32, #tpu.memory_space<vmem>>, %arg4: memref<64x32xbf16, #tpu.memory_space<vmem>>, %arg5: memref<1x32xf32, #tpu.memory_space<vmem>>, %arg6: memref<1x32xf32, #tpu.memory_space<vmem>>, %arg7: memref<1x32xf32, #tpu.memory_space<vmem>>, %arg8: memref<16x32xf32, #tpu.memory_space<vmem>>) attributes {dimension_semantics = [#tpu.dimension_semantics<parallel>], iteration_bounds = array<i64: 1>, scalar_prefetch = 0 : i64, scratch_operands = 0 : i64, tpu.core_type = #tpu.core_type<tc>, window_params = [{transform_indices = @transform_0, window_bounds = array<i64: 16, 32>}, {pipeline_mode = #tpu.pipeline_mode<synchronous>, transform_indices = @transform_1, window_bounds = array<i64: 32, 64>}, {pipeline_mode = #tpu.pipeline_mode<synchronous>, transform_indices = @transform_2, window_bounds = array<i64: 1, 64>}, {pipeline_mode = #tpu.pipeline_mode<synchronous>, transform_indices = @transform_3, window_bounds = array<i64: 64, 32>}, {pipeline_mode = #tpu.pipeline_mode<synchronous>, transform_indices = @transform_4, window_bounds = array<i64: 1, 32>}, {pipeline_mode = #tpu.pipeline_mode<synchronous>, transform_indices = @transform_5, window_bounds = array<i64: 1, 32>}, {pipeline_mode = #tpu.pipeline_mode<synchronous>, transform_indices = @transform_6, window_bounds = array<i64: 1, 32>}, {transform_indices = @transform_7, window_bounds = array<i64: 16, 32>}]} {
    %c0 = arith.constant 0 : index
    %c0_0 = arith.constant 0 : index
    %0 = vector.load %arg1[%c0, %c0_0] : memref<16x32xf32, #tpu.memory_space<vmem>>, vector<16x32xf32>
    %1 = arith.truncf %0 : vector<16x32xf32> to vector<16x32xbf16>
    %c0_1 = arith.constant 0 : index
    %c0_2 = arith.constant 0 : index
    %2 = vector.load %arg2[%c0_1, %c0_2] : memref<32x64xbf16, #tpu.memory_space<vmem>>, vector<32x64xbf16>
    %cst = arith.constant dense<0.000000e+00> : vector<16x64xf32>
    %3 = tpu.matmul %1, %2, %cst {dimension_numbers = #tpu.dot_dimension_numbers<[1], [0], [0], [1], [0, 0, 1, 1], [], []>} : vector<16x32xbf16>, vector<32x64xbf16>, vector<16x64xf32> -> vector<16x64xf32>
    %c0_3 = arith.constant 0 : index
    %c0_4 = arith.constant 0 : index
    %4 = vector.load %arg3[%c0_3, %c0_4] : memref<1x64xf32, #tpu.memory_space<vmem>>, vector<1x64xf32>
    %5 = vector.broadcast %4 : vector<1x64xf32> to vector<16x64xf32>
    %6 = arith.addf %3, %5 : vector<16x64xf32>
    %cst_5 = arith.constant 0.000000e+00 : f32
    %7 = vector.broadcast %cst_5 : f32 to vector<16x64xf32>
    %8 = arith.maximumf %6, %7 : vector<16x64xf32>
    %9 = arith.truncf %8 : vector<16x64xf32> to vector<16x64xbf16>
    %c0_6 = arith.constant 0 : index
    %c0_7 = arith.constant 0 : index
    %10 = vector.load %arg4[%c0_6, %c0_7] : memref<64x32xbf16, #tpu.memory_space<vmem>>, vector<64x32xbf16>
    %cst_8 = arith.constant dense<0.000000e+00> : vector<16x32xf32>
    %11 = tpu.matmul %9, %10, %cst_8 {dimension_numbers = #tpu.dot_dimension_numbers<[1], [0], [0], [1], [0, 0, 1, 1], [], []>} : vector<16x64xbf16>, vector<64x32xbf16>, vector<16x32xf32> -> vector<16x32xf32>
    %c0_9 = arith.constant 0 : index
    %c0_10 = arith.constant 0 : index
    %12 = vector.load %arg5[%c0_9, %c0_10] : memref<1x32xf32, #tpu.memory_space<vmem>>, vector<1x32xf32>
    %13 = vector.broadcast %12 : vector<1x32xf32> to vector<16x32xf32>
    %14 = arith.addf %11, %13 : vector<16x32xf32>
    %15 = arith.addf %14, %0 : vector<16x32xf32>
    %cst_11 = arith.constant dense<0.000000e+00> : vector<16xf32>
    %16 = vector.multi_reduction <add>, %15, %cst_11 [1] : vector<16x32xf32> to vector<16xf32>
    %17 = vector.shape_cast %16 : vector<16xf32> to vector<16x1xf32>
    %cst_12 = arith.constant 3.200000e+01 : f32
    %18 = vector.broadcast %cst_12 : f32 to vector<16x1xf32>
    %19 = arith.divf %17, %18 : vector<16x1xf32>
    %20 = vector.broadcast %19 : vector<16x1xf32> to vector<16x32xf32>
    %21 = arith.subf %15, %20 : vector<16x32xf32>
    %22 = arith.mulf %21, %21 : vector<16x32xf32>
    %cst_13 = arith.constant dense<0.000000e+00> : vector<16xf32>
    %23 = vector.multi_reduction <add>, %22, %cst_13 [1] : vector<16x32xf32> to vector<16xf32>
    %24 = vector.shape_cast %23 : vector<16xf32> to vector<16x1xf32>
    %cst_14 = arith.constant 3.200000e+01 : f32
    %25 = vector.broadcast %cst_14 : f32 to vector<16x1xf32>
    %26 = arith.divf %24, %25 : vector<16x1xf32>
    %27 = vector.broadcast %19 : vector<16x1xf32> to vector<16x32xf32>
    %28 = arith.subf %15, %27 : vector<16x32xf32>
    %cst_15 = arith.constant 9.99999997E-7 : f32
    %29 = vector.broadcast %cst_15 : f32 to vector<16x1xf32>
    %30 = arith.addf %26, %29 : vector<16x1xf32>
    %31 = math.rsqrt %30 : vector<16x1xf32>
    %32 = vector.broadcast %31 : vector<16x1xf32> to vector<16x32xf32>
    %33 = arith.mulf %28, %32 : vector<16x32xf32>
    %c0_16 = arith.constant 0 : index
    %c0_17 = arith.constant 0 : index
    %34 = vector.load %arg6[%c0_16, %c0_17] : memref<1x32xf32, #tpu.memory_space<vmem>>, vector<1x32xf32>
    %35 = vector.broadcast %34 : vector<1x32xf32> to vector<16x32xf32>
    %36 = arith.mulf %33, %35 : vector<16x32xf32>
    %c0_18 = arith.constant 0 : index
    %c0_19 = arith.constant 0 : index
    %37 = vector.load %arg7[%c0_18, %c0_19] : memref<1x32xf32, #tpu.memory_space<vmem>>, vector<1x32xf32>
    %38 = vector.broadcast %37 : vector<1x32xf32> to vector<16x32xf32>
    %39 = arith.addf %36, %38 : vector<16x32xf32>
    %c0_20 = arith.constant 0 : index
    %c0_21 = arith.constant 0 : index
    %40 = vector.load %arg8[%c0_20, %c0_21] : memref<16x32xf32, #tpu.memory_space<vmem>>, vector<16x32xf32>
    tpu.vector_store %arg8[%c0_20, %c0_21], %39 {strides = array<i32>} : memref<16x32xf32, #tpu.memory_space<vmem>>, vector<16x32xf32>,
    return
  }
  func.func @transform_0(%arg0: i32) -> (i32, i32) {
    %c0_i32 = arith.constant 0 : i32
    %c0_i32_0 = arith.constant 0 : i32
    return %arg0, %c0_i32 : i32, i32
  }
  func.func @transform_1(%arg0: i32) -> (i32, i32) {
    %c0_i32 = arith.constant 0 : i32
    %c0_i32_0 = arith.constant 0 : i32
    %c0_i32_1 = arith.constant 0 : i32
    return %c0_i32, %c0_i32_0 : i32, i32
  }
  func.func @transform_2(%arg0: i32) -> (i32, i32) {
    %c0_i32 = arith.constant 0 : i32
    %c0_i32_0 = arith.constant 0 : i32
    %c0_i32_1 = arith.constant 0 : i32
    return %c0_i32, %c0_i32_0 : i32, i32
  }
  func.func @transform_3(%arg0: i32) -> (i32, i32) {
    %c0_i32 = arith.constant 0 : i32
    %c0_i32_0 = arith.constant 0 : i32
    %c0_i32_1 = arith.constant 0 : i32
    return %c0_i32, %c0_i32_0 : i32, i32
  }
  func.func @transform_4(%arg0: i32) -> (i32, i32) {
    %c0_i32 = arith.constant 0 : i32
    %c0_i32_0 = arith.constant 0 : i32
    %c0_i32_1 = arith.constant 0 : i32
    return %c0_i32, %c0_i32_0 : i32, i32
  }
  func.func @transform_5(%arg0: i32) -> (i32, i32) {
    %c0_i32 = arith.constant 0 : i32
    %c0_i32_0 = arith.constant 0 : i32
    %c0_i32_1 = arith.constant 0 : i32
    return %c0_i32, %c0_i32_0 : i32, i32
  }
  func.func @transform_6(%arg0: i32) -> (i32, i32) {
    %c0_i32 = arith.constant 0 : i32
    %c0_i32_0 = arith.constant 0 : i32
    %c0_i32_1 = arith.constant 0 : i32
    return %c0_i32, %c0_i32_0 : i32, i32
  }
  func.func @transform_7(%arg0: i32) -> (i32, i32) {
    %c0_i32 = arith.constant 0 : i32
    %c0_i32_0 = arith.constant 0 : i32
    return %arg0, %c0_i32 : i32, i32
  }
}

</mosaic_0001>

<bundles_post_ra>
// kernel: decoder_layer.8
= control target key start
LH: loop header
LB: loop body
LE: loop exit
PB: predicated region body
PF: predicated region fallthrough
CT: control target
= control target key end

     0   :  { %10 = vsyncpa [#allocation3], 0  ;;  %s145_s18 = smov [#allocation2]   ;;  %s146_s20 = smov 64   ;;  %s207_s0 = inlined_call_operand.vmem [shape: f32[16,32], index: 0, kind: input, shape index: {}]   ;;  %s208_s1 = inlined_call_operand.hbm [shape: bf16[32,96], index: 1, kind: input, shape index: {}]   ;;  %s209_s2 = inlined_call_operand.vmem [shape: bf16[16,32], index: 2, kind: output, shape index: {0}]   ;;  %s210_s3 = inlined_call_operand.vmem [shape: bf16[16,32], index: 3, kind: output, shape index: {1}]   ;;  %s211_s4 = inlined_call_operand.vmem [shape: bf16[16,32], index: 4, kind: output, shape index: {2}]  }
   0x1   :  { %s17_s17 = sshll.u32 %s208_s1, 4  ;;  %s19_s19 = sshll.u32 %s145_s18, 4  ;;  %s18_s17 = int_to_ptr.hbm [resolvable:$true] %s17_s17  ;;  %s20_s19 = int_to_ptr.vmem [resolvable:$true] %s19_s19 }
   0x2   :  { %s147_s21 = smov 4  }
   0x3   :  { %25 = dma.hbm_to_vmem [thread:$0]  %s18_s17, 256, %s20_s19, [#allocation3], %s146_s20, %s146_s20, %s147_s21  }
   0x4   :  { %143 = dma.done.wait [#allocation3], 256  }
   0x5   :  { %144 = vsyncadd [#allocation3], 4294967040  ;;  %v114_v0 = vld [vmem:[#allocation2 + $0x8] sm:$0xff]  ;;  %v113_v1 = vld [vmem:[#allocation2] sm:$0xff]  ;;  %vm50_vm0 = vcmask 261120   ;;  %vm70_vm1 = vcmask 257024  }
   0x6   :  { %60 = vmatpush.bf16.msra.mxu0 %v114_v0  ;;  %v31_v2 = vld [vmem:[%s207_s0] sm:$0xff]  ;;  %v32_v3 = vld [vmem:[%s207_s0 + $0x8] sm:$0xff]  ;;  %s148_s27 = smov 96  }
   0x7   :  { %v33_v4 = vpack.c.bf16 %v32_v3, %v31_v2 }
   0xa   :  { %61 = vmatpush.bf16.msra.mxu0 %v113_v1 }
   0xd   :  { %112 = vmatmul.msk.bf16.vlgmr.msra.gmra.mxu0 %vm50_vm0, %v33_v4 }
  0x8a   :  { %v63_v5 = vpop.f32.mrf.mxu0 }
  0x8b   :  { %v68_v6 = vpack.c.bf16 %v63_v5, %v63_v5 }
  0x8d   :  { %71 = vst.msk [vmem:[%s209_s2] sm:$0xf] %vm70_vm1, %v68_v6  ;;  %83 = vrot.lane.b32.xlu1 %v68_v6, %s146_s20  ;;  %75 = vrot.lane.b32.xlu0 %v68_v6, %s148_s27 }
  0x92   :  { %v65_v7 = vpop.f32.mrf.mxu0 }
  0x93   :  { %v69_v8 = vpack.c.bf16 %v65_v7, %v65_v7 }
  0x95   :  { %72 = vst.msk [vmem:[%s209_s2 + $0x4] sm:$0xf] %vm70_vm1, %v69_v8  ;;  %85 = vrot.lane.b32.xlu1 %v69_v8, %s146_s20  ;;  %77 = vrot.lane.b32.xlu0 %v69_v8, %s148_s27 }
  0xff   :  { %v84_v9 = vpop.permute.xlu1 %83  ;;  %v76_v10 = vpop.permute.xlu0 %75 }
 0x100   :  { %89 = vst.msk [vmem:[%s211_s4] sm:$0xf] %vm70_vm1, %v84_v9 }
 0x101   :  { %81 = vst.msk [vmem:[%s210_s3] sm:$0xf] %vm70_vm1, %v76_v10 }
 0x107   :  { %v86_v11 = vpop.permute.xlu1 %85  ;;  %v78_v12 = vpop.permute.xlu0 %77 }
 0x108   :  { %90 = vst.msk [vmem:[%s211_s4 + $0x4] sm:$0xf] %vm70_vm1, %v86_v11 }
 0x109   :  { %82 = vst.msk [vmem:[%s210_s3 + $0x4] sm:$0xf] %vm70_vm1, %v78_v12 }
 0x10a   :  { %103 = vsyncpa [#allocation3], 1 }

// kernel: decoder_layer.10
= control target key start
LH: loop header
LB: loop body
LE: loop exit
PB: predicated region body
PF: predicated region fallthrough
CT: control target
= control target key end

     0   :  { %10 = vsyncpa [#allocation3], 0  ;;  %s314_s0 = inlined_call_operand.vmem [shape: bf16[16,32], index: 0, kind: input, shape index: {}]   ;;  %s315_s1 = inlined_call_operand.hbm [shape: bf16[32,32], index: 1, kind: input, shape index: {}]   ;;  %s316_s2 = inlined_call_operand.vmem [shape: f32[16,32], index: 2, kind: input, shape index: {}]   ;;  %s317_s3 = inlined_call_operand.vmem [shape: f32[1,32], index: 3, kind: input, shape index: {}]   ;;  %s318_s4 = inlined_call_operand.hbm [shape: f32[1,32], index: 4, kind: input, shape index: {}]   ;;  %s319_s5 = inlined_call_operand.vmem [shape: f32[16,32], index: 5, kind: output, shape index: {}]  }
   0x1   :  { %s18_s20 = sshll.u32 %s315_s1, 4  ;;  %s19_s20 = int_to_ptr.hbm [resolvable:$true] %s18_s20 }
   0x2   :  { %11 = vsyncpa [#allocation5], 0  ;;  %s248_s21 = smov [#allocation2]   ;;  %s36_s25 = sshll.u32 %s318_s4, 4  ;;  %s37_s25 = int_to_ptr.hbm [resolvable:$true] %s36_s25 }
   0x3   :  { %s20_s22 = sshll.u32 %s248_s21, 4  ;;  %s249_s26 = smov 64   ;;  %s21_s22 = int_to_ptr.vmem [resolvable:$true] %s20_s22 }
   0x4   :  { %s250_s27 = smov 4   ;;  %s251_s28 = smov [#allocation4]  }
   0x5   :  { %26 = dma.hbm_to_vmem [thread:$0]  %s19_s20, 256, %s21_s22, [#allocation3], %s249_s26, %s249_s26, %s250_s27  }
   0x6   :  { %s38_s29 = sshll.u32 %s251_s28, 4  ;;  %s39_s29 = int_to_ptr.vmem [resolvable:$true] %s38_s29 }
   0x7   :  { %41 = dma.hbm_to_vmem [thread:$0]  %s37_s25, 16, %s39_s29, [#allocation5]  }
   0x8   :  { %244 = dma.done.wait [#allocation3], 256  }
   0x9   :  { %245 = vsyncadd [#allocation3], 4294967040 }
   0xa   :  { %246 = dma.done.wait [#allocation5], 16  }
   0xb   :  { %247 = vsyncadd [#allocation5], 4294967280  ;;  %v182_v0 = vld [vmem:[#allocation2 + $0x8] sm:$0xff]  ;;  %v181_v1 = vld [vmem:[#allocation2] sm:$0xff]  ;;  %vm76_vm0 = vcmask 261120   ;;  %v252_v11 = vmov 32.0  }
   0xc   :  { %86 = vmatpush.bf16.msra.mxu0 %v182_v0  ;;  %v180_v2 = vld [vmem:[%s314_s0] sm:$0xff]  ;;  %v52_v7 = vld [vmem:[%s316_s2 + $0x8] sm:$0xff]  ;;  %190 = vrcp.f32 %v252_v11  ;;  %v189_v45 = vld [vmem:[#allocation4] ss:$0 sm:$0xff] }
   0xd   :  { %v51_v3 = vld [vmem:[%s316_s2] sm:$0xff] }
   0xe   :  { %v188_v42 = vld [vmem:[%s317_s3] ss:$0 sm:$0xff] }
  0x10   :  { %87 = vmatpush.bf16.msra.mxu0 %v181_v1 }
  0x12   :  { %v191_v12 = vpop.eup %190 }
  0x13   :  { %179 = vmatmul.msk.bf16.vlgmr.msra.gmra.mxu0 %vm76_vm0, %v180_v2  ;;  %v103_v13 = vmul.f32 32.0, %v191_v12  ;;  %vm107_vm1 = vweird.f32 %v191_v12 }
  0x15   :  { %v104_v14 = vsub.f32 1.0, %v103_v13 }
  0x17   :  { %v105_v15 = vmul.f32 %v191_v12, %v104_v14 }
  0x19   :  { %v106_v16 = vadd.f32 %v191_v12, %v105_v15 }
  0x1b   :  { %v108_v17 = vsel %vm107_vm1, %v191_v12, %v106_v16 }
  0x90   :  { %v89_v4 = vpop.f32.mrf.mxu0 }
  0x91   :  { %v94_v5 = vadd.f32 %v89_v4, %v51_v3 }
  0x93   :  { %v96_v6 = vsel %vm76_vm0, %v94_v5, 0.0 }
  0x94   :  { %97 = vadd.xlane.f32.xlu0 %v96_v6 }
  0x98   :  { %v91_v8 = vpop.f32.mrf.mxu0 }
  0x99   :  { %v95_v9 = vadd.f32 %v91_v8, %v52_v7 }
  0x9b   :  { %v99_v10 = vsel %vm76_vm0, %v95_v9, 0.0 }
  0x9c   :  { %100 = vadd.xlane.f32.xlu0 %v99_v10 }
 0x107   :  { %v98_v18 = vpop.xlane.xlu0 %97 }
 0x108   :  { %v109_v19 = vmul.f32 %v108_v17, %v98_v18 }
 0x10a   :  { %v111_v20 = vsub.f32 %v94_v5, %v109_v19 }
 0x10c   :  { %v113_v21 = vmul.f32 %v111_v20, %v111_v20 }
 0x10e   :  { %v115_v22 = vsel %vm76_vm0, %v113_v21, 0.0 }
 0x10f   :  { %116 = vadd.xlane.f32.xlu1 %v115_v22  ;;  %v101_v23 = vpop.xlane.xlu0 %100 }
 0x110   :  { %v110_v24 = vmul.f32 %v108_v17, %v101_v23 }
 0x112   :  { %v112_v25 = vsub.f32 %v95_v9, %v110_v24 }
 0x114   :  { %v114_v26 = vmul.f32 %v112_v25, %v112_v25 }
 0x116   :  { %v118_v27 = vsel %vm76_vm0, %v114_v26, 0.0 }
 0x117   :  { %119 = vadd.xlane.f32.xlu1 %v118_v27 }
 0x182   :  { %v117_v28 = vpop.xlane.xlu1 %116 }
 0x183   :  { %v121_v29 = vmul.f32 %v117_v28, %v108_v17 }
 0x185   :  { %v123_v30 = vadd.f32 1e-06, %v121_v29 }
 0x187   :  { %192 = vrsqrt.f32 %v123_v30  ;;  %vm131_vm3 = vweird.f32 %v123_v30 }
 0x18a   :  { %v120_v31 = vpop.xlane.xlu1 %119 }
 0x18b   :  { %v122_v32 = vmul.f32 %v120_v31, %v108_v17 }
 0x18d   :  { %v193_v33 = vpop.eup %192  ;;  %v124_v34 = vadd.f32 1e-06, %v122_v32 }
 0x18e   :  { %v126_v35 = vmul.f32 %v193_v33, %v123_v30  ;;  %vm132_vm2 = vweird.f32 %v193_v33 }
 0x18f   :  { %194 = vrsqrt.f32 %v124_v34  ;;  %vm133_vm4 = vmor %vm131_vm3, %vm132_vm2  ;;  %vm141_vm6 = vweird.f32 %v124_v34 }
 0x190   :  { %v127_v36 = vmul.f32 %v193_v33, %v126_v35 }
 0x192   :  { %v128_v37 = vmul.f32 0.5, %v127_v36 }
 0x194   :  { %v129_v38 = vsub.f32 1.5, %v128_v37 }
 0x195   :  { %v195_v39 = vpop.eup %194 }
 0x196   :  { %v130_v40 = vmul.f32 %v193_v33, %v129_v38  ;;  %v136_v41 = vmul.f32 %v195_v39, %v124_v34  ;;  %vm142_vm5 = vweird.f32 %v195_v39 }
 0x197   :  { %vm143_vm7 = vmor %vm141_vm6, %vm142_vm5 }
 0x198   :  { %v134_v43 = vsel %vm133_vm4, %v193_v33, %v130_v40  ;;  %v137_v44 = vmul.f32 %v195_v39, %v136_v41 }
 0x199   :  { %v145_v46 = vmul.f32 %v134_v43, %v111_v20 }
 0x19a   :  { %v138_v47 = vmul.f32 0.5, %v137_v44 }
 0x19b   :  { %v151_v48 = vmul.f32 %v188_v42, %v145_v46 }
 0x19c   :  { %v139_v49 = vsub.f32 1.5, %v138_v47 }
 0x19d   :  { %v157_v50 = vadd.f32 %v189_v45, %v151_v48 }
 0x19e   :  { %v140_v51 = vmul.f32 %v195_v39, %v139_v49 }
 0x19f   :  { %159 = vst.msk [vmem:[%s319_s5] sm:$0xff] %vm76_vm0, %v157_v50 }
 0x1a0   :  { %v144_v52 = vsel %vm143_vm7, %v195_v39, %v140_v51 }
 0x1a1   :  { %v146_v53 = vmul.f32 %v144_v52, %v112_v25 }
 0x1a3   :  { %v152_v54 = vmul.f32 %v188_v42, %v146_v53 }
 0x1a5   :  { %v158_v55 = vadd.f32 %v189_v45, %v152_v54 }
 0x1a7   :  { %160 = vst.msk [vmem:[%s319_s5 + $0x8] sm:$0xff] %vm76_vm0, %v158_v55 }
 0x1a8   :  { %165 = vsyncpa [#allocation3], 1 }
 0x1a9   :  { %166 = vsyncpa [#allocation5], 1 }

// kernel: decoder_layer.9
= control target key start
LH: loop header
LB: loop body
LE: loop exit
PB: predicated region body
PF: predicated region fallthrough
CT: control target
= control target key end

     0   :  { %11 = vsyncpa [#allocation3], 0  ;;  %s1398_s0 = inlined_call_operand.vmem [shape: f32[8,8], index: 0, kind: input, shape index: {}]   ;;  %s1399_s1 = inlined_call_operand.vmem [shape: bf16[2,8,32], index: 1, kind: input, shape index: {}]   ;;  %s1400_s2 = inlined_call_operand.vmem [shape: bf16[2,8,32], index: 2, kind: input, shape index: {}]   ;;  %s1401_s3 = inlined_call_operand.vmem [shape: bf16[2,8,32], index: 3, kind: input, shape index: {}]   ;;  %s1402_s4 = inlined_call_operand.vmem [shape: bf16[2,8,32], index: 4, kind: output, shape index: {0}]   ;;  %s1403_s5 = inlined_call_operand.hbm [shape: f32[2,4,8,8], index: 5, kind: output, shape index: {1}]  }
   0x1   :  { %13 = vsyncpa [#allocation3 + $0x1], 0  ;;  %s1141_s18 = smov 0   ;;  %s1143_s19 = smov 0  }
   0x2   :  { %s1145_s20 = smov 0   ;;  %s1147_s21 = smov 0  }
   0x3   :  { %s1149_s22 = smov 0   ;;  %s1151_s23 = smov 0  }
   0x4 LB: > { %s914_s24 = sadd.s32 4294967295, %s1100_s23   ;;  %s915_s25 = sadd.s32 4294967294, %s1100_s23   ;;  %s1100_s23 = sphi %s1151_s23, %s19_s23   ;;  %s1096_s22 = sphi %s1149_s22, %s1412_s22   ;;  %s1092_s21 = sphi %s1147_s21, %s1411_s21   ;;  %s1088_s20 = sphi %s1145_s20, %s1410_s20   ;;  %s1084_s19 = sphi %s1143_s19, %s1409_s19   ;;  %s1080_s18 = sphi %s1141_s18, %s1408_s18  }
   0x5   : > { %s31_s26 = sadd.s32 1, %s1096_s22  ;;  %s174_s27 = sadd.s32 1, %s1088_s20 }
   0x6   : > { %p33_p0 = scmp.ge.s32.totalorder %s31_s26, 2  ;;  %p184_p1 = scmp.ne.s32.totalorder %s1088_s20, %s1084_s19 }
   0x7   : > { %p185_p2 = scmp.eq.s32.totalorder %s914_s24, 1  ;;  %p190_p3 = scmp.ne.s32.totalorder %s1084_s19, %s1080_s18 }
   0x8   : > { %s1414_s26 = smov (%p33_p0, %s31_s26), 0  ;;  %p191_p5 = scmp.eq.s32.totalorder %s915_s25, 1 }
   0x9   : > { %p1181_p4 = por %p185_p2, %p184_p1  ;;  %s169_s29 = ssub.s32 %s1096_s22, %s1414_s26 }
   0xa   : > { %p919_p6 = scmp.ge.s32.totalorder %s1100_s23, 1  ;;  %p172_p7 = scmp.eq.s32.totalorder %s169_s29, 0 }
   0xb   : > { %p1188_p8 = por %p191_p5, %p190_p3  ;;  %p240_p9 = scmp.lt.s32.totalorder %s1100_s23, 3 }
   0xc   : > { %s1194_s6 = scalar_select %p172_p7, %s1088_s20, %s174_s27  }
   0xd   : > { %p241_p10 = pnand %p919_p6, %p240_p9 }
   0xe   : > { %p293_p11 = scmp.lt.s32.totalorder (!%p241_p10), %s1092_s21, 1  ;;  %s1404_s17 = smov (!%p241_p10), 8  }
   0xf   : > { %244 = sbr.rel (%p241_p10) target bundleno = 1795 (0x703), region = 36  ;;  %s1103_s24 = smov (!%p241_p10), 120  }
  0x10   : > { %s1104_s25 = smov (!%p241_p10), 104   ;;  %s1105_s27 = smov (!%p241_p10), 127  }
  0x11   : > { %s1106_s29 = smov (!%p241_p10), 121   ;;  %s286_s12 = sand.u32 (!%p241_p10), 1, %s1084_s19  }
  0x12   : > { %s920_s13 = sshll.u32 (!%p241_p10), %s286_s12, 5  ;;  %s941_s16 = sshll.u32 (!%p241_p10), %s1092_s21, 5 }
  0x14   : > { %s294_s7 = scalar_select %p293_p11, %s1092_s21, 1  ;;  %vm322_vm0 = vcmask 64512   ;;  %v1219_v3 = vld [vmem:[%s1398_s0] sm:$0xff]  ;;  %vm368_vm5 = vcmask 1047616   ;;  %vm396_vm6 = vcmask 1043456   ;;  %v317_v56 = vlaneseq }
  0x15   : > { %s1042_s21 = scalar_lea.hbm %s1403_s5, 64 }
  0x16   : > { %s1198_s8 = sshll.u32 %s294_s7, 2  ;;  %s1107_s7 = smov 112   ;;  %v318_v59 = vand.u32 127, %v317_v56 }
  0x17   : > { %s1204_s11 = scalar_lea.vmem %s1400_s2, %s1198_s8  ;;  %s1212_s14 = scalar_lea.vmem %s1399_s1, %s1198_s8 }
  0x18   : > { %v320_v0 = vld [vmem:[%s1204_s11] sm:$0xf]  ;;  %v1260_v60 = vadd.s32 4294967295, %v318_v59  ;;  %v1263_v61 = vadd.s32 1, %v318_v59 }
  0x19   : > { %v327_v1 = vsel %vm322_vm0, %v320_v0, 0  ;;  %v319_v2 = vld [vmem:[%s1212_s14] sm:$0xf] }
  0x1a   : > { %336 = vmatpush.bf16.xpose.msra.mxu0 %v327_v1  ;;  %v414_v25 = vld [vmem:[%s1204_s11] sm:$0xf]  ;;  %vm376_vm7 = vcmp.ge.s32.totalorder %v1260_v60, 0  ;;  %vm384_vm8 = vcmp.lt.s32.totalorder %v1263_v61, 8 }
  0x1b   : > { %v422_v26 = vunpack.c.l.b16 %v414_v25  ;;  %v413_v28 = vld [vmem:[%s1212_s14] sm:$0xf] }
  0x1c   : > { %v417_v31 = vunpack.c.l.b16 %v413_v28  ;;  %v620_v33 = vld [vmem:[%s1204_s11] sm:$0xf] }
  0x1d   : > { %v423_v27 = vpack.c.b16 %v422_v26, %v422_v26  ;;  %v628_v34 = vunpack.c.l.b16 %v620_v33  ;;  %v619_v36 = vld [vmem:[%s1212_s14] sm:$0xf] }
  0x1e   : > { %v418_v32 = vpack.c.b16 %v417_v31, %v417_v31  ;;  %v623_v37 = vunpack.c.l.b16 %v619_v36  ;;  %v517_v41 = vld [vmem:[%s1204_s11] sm:$0xf]  ;;  %s1255_s11 = scalar_lea.vmem %s1401_s3, %s1198_s8 }
  0x1f   : > { %424 = vrot.lane.b32.xlu2 %v423_v27, %s1103_s24  ;;  %v629_v35 = vpack.c.b16 %v628_v34, %v628_v34  ;;  %v525_v44 = vunpack.c.l.b16 %v517_v41  ;;  %v516_v46 = vld [vmem:[%s1212_s14] sm:$0xf]  ;;  %s1274_s14 = scalar_lea.vmem [#allocation2], %s920_s13 }
  0x20   : > { %v624_v38 = vpack.c.b16 %v623_v37, %v623_v37  ;;  %v520_v48 = vunpack.c.l.b16 %v516_v46  ;;  %v321_v53 = vld [vmem:[%s1255_s11] sm:$0xf]  ;;  %s766_s15 = sshll.u32 %s1274_s14, 4  ;;  %s767_s15 = int_to_ptr.vmem [resolvable:$true] %s766_s15 }
  0x21   : > { %925 = vmatmul.msk.bf16.vlgmr.msra.gmra.mxu0 %vm322_vm0, %v319_v2  ;;  %v526_v45 = vpack.c.b16 %v525_v44, %v525_v44  ;;  %v398_v54 = vsel %vm396_vm6, %v321_v53, 0 }
  0x22   : > { %v521_v49 = vpack.c.b16 %v520_v48, %v520_v48  ;;  %407 = vmatpush.bf16.msra.mxu1 %v398_v54 }
  0x79   : > { %v425_v39 = vpop.permute.xlu2 %424 }
  0x7a   : > { %v430_v40 = vsel %vm322_vm0, %v425_v39, 0 }
  0x7b   : > { %439 = vmatpush.bf16.xpose.msra.mxu2 %v430_v40 }
  0x9e   : > { %v338_v4 = vpop.f32.mrf.mxu0 }
  0x9f   : > { %v342_v5 = vmul.f32 %v338_v4, %v1219_v3 }
  0xa1   : > { %v343_v6 = vsel %vm322_vm0, %v342_v5, -inf }
  0xa2   : > { %344 = vmax.xlane.f32.xlu0 %v343_v6 }
  0xa6   : > { %v340_v7 = vpop.f32.mrf.mxu0 }
 0x115   : > { %v345_v8 = vpop.xlane.xlu0 %344 }
 0x116   : > { %v346_v9 = vsub.f32 %v342_v5, %v345_v8 }
 0x118   : > { %v347_v10 = vmul.f32 1.442695, %v346_v9 }
 0x11a   : > { %1006 = vpow2.f32 %v347_v10 }
 0x120   : > { %v1007_v11 = vpop.eup %1006 }
 0x121   : > { %v349_v12 = vsel %vm322_vm0, %v1007_v11, 0.0 }
 0x122   : > { %350 = vadd.xlane.f32.xlu0 %v349_v12 }
 0x195   : > { %v351_v13 = vpop.xlane.xlu0 %350 }
 0x196   : > { %1008 = vrcp.f32 %v351_v13  ;;  %v363_v17 = vand.u32 2147483648, %v351_v13  ;;  %v361_v19 = vand.u32 2147483647, %v351_v13  ;;  %vm357_vm2 = vweird.f32 %v351_v13 }
 0x198   : > { %v364_v21 = vor.u32 1.1754944e-38, %v363_v17  ;;  %vm362_vm4 = vcmp.eq.f32.partialorder %v361_v19, 8.507059e+37 }
 0x19c   : > { %v1009_v14 = vpop.eup %1008 }
 0x19d   : > { %v353_v15 = vmul.f32 %v1009_v14, %v351_v13  ;;  %vm358_vm1 = vweird.f32 %v1009_v14 }
 0x19e   : > { %vm359_vm3 = vmor %vm357_vm2, %vm358_vm1 }
 0x19f   : > { %v354_v16 = vsub.f32 1.0, %v353_v15 }
 0x1a1   : > { %v355_v18 = vmul.f32 %v1009_v14, %v354_v16 }
 0x1a3   : > { %v356_v20 = vadd.f32 %v1009_v14, %v355_v18 }
 0x1a5   : > { %v360_v22 = vsel %vm359_vm3, %v1009_v14, %v356_v20 }
 0x1a6   : > { %v365_v23 = vsel %vm362_vm4, %v364_v21, %v360_v22 }
 0x1a7   : > { %v1224_v24 = vmul.f32 %v1007_v11, %v365_v23 }
 0x1a9   : > { %369 = vrot.lane.b32.xlu1 %v1224_v24, %s1404_s17 }
 0x21b   : > { %v370_v29 = vpop.permute.xlu1 %369 }
 0x21c   : > { %v371_v30 = vsel %vm368_vm5, %v370_v29, %v1224_v24 }
 0x21d   : > { %372 = vrot.lane.b32.xlu1 %v371_v30, %s1404_s17 }
 0x225   : > { %419 = vrot.lane.b32.xlu1 %v418_v32, %s1103_s24 }
 0x22d   : > { %630 = vrot.lane.b32.xlu1 %v629_v35, %s1104_s25 }
 0x235   : > { %625 = vrot.lane.b32.xlu1 %v624_v38, %s1104_s25 }
 0x28f   : > { %v373_v42 = vpop.permute.xlu1 %372 }
 0x290   : > { %v374_v43 = vsel %vm368_vm5, %v373_v42, %v1224_v24 }
 0x291   : > { %385 = vrot.lane.b32.xlu0 %v374_v43, %s1105_s27  ;;  %378 = vrot.lane.b32.xlu2 %v374_v43, %s1106_s29 }
 0x297   : > { %v420_v47 = vpop.permute.xlu1 %419 }
 0x298   : > { %927 = vmatmul.msk.bf16.vlgmr.msra.gmra.mxu2 %vm322_vm0, %v420_v47 }
 0x299   : > { %527 = vrot.lane.b32.xlu2 %v526_v45, %s1107_s7 }
 0x29f   : > { %v631_v50 = vpop.permute.xlu1 %630 }
 0x2a0   : > { %v636_v51 = vsel %vm322_vm0, %v631_v50, 0 }
 0x2a1   : > { %645 = vmatpush.bf16.xpose.msrb.mxu0 %v636_v51  ;;  %522 = vrot.lane.b32.xlu2 %v521_v49, %s1107_s7 }
 0x2a7   : > { %v626_v52 = vpop.permute.xlu1 %625 }
 0x2a8   : > { %933 = vmatmul.msk.bf16.vlgmr.msrb.gmra.mxu0 %vm322_vm0, %v626_v52 }
 0x2eb   : > { %v379_v55 = vpop.permute.xlu2 %378 }
 0x2ec   : > { %v381_v62 = vsel %vm376_vm7, %v379_v55, 0.0 }
 0x2ed   : > { %v382_v63 = vadd.f32 %v381_v62, %v1224_v24 }
 0x2f3   : > { %v528_v57 = vpop.permute.xlu2 %527 }
 0x2f4   : > { %v533_v58 = vsel %vm322_vm0, %v528_v57, 0 }
 0x2f5   : > { %542 = vmatpush.bf16.xpose.msrb.mxu1 %v533_v58 }
 0x2fb   : > { %v523_v6 = vpop.permute.xlu2 %522 }
 0x303   : > { %v386_v0 = vpop.permute.xlu0 %385 }
 0x304   : > { %v388_v1 = vsel %vm384_vm8, %v386_v0, 0.0 }
 0x305   : > { %v389_v2 = vadd.f32 %v388_v1, %v382_v63 }
 0x307   : > { %v390_v4 = vmul.f32 0.33333334, %v389_v2 }
 0x309   : > { %391 = vst.msk [vmem:[%s1274_s14] sm:$0xff] %vm322_vm0, %v390_v4  ;;  %v392_v5 = vpack.c.bf16 %v390_v4, %v390_v4 }
 0x30b   : > { %926 = vmatmul.msk.bf16.vlgmr.msra.gmra.mxu1 %vm322_vm0, %v392_v5 }
 0x31b   : > { %v441_v7 = vpop.f32.mrf.mxu2  ;;  %930 = vmatmul.msk.bf16.vlgmr.msrb.gmra.mxu1 %vm322_vm0, %v523_v6 }
 0x31c   : > { %v445_v8 = vmul.f32 %v441_v7, %v1219_v3 }
 0x31e   : > { %v446_v9 = vsel %vm322_vm0, %v445_v8, -inf }
 0x31f   : > { %447 = vmax.xlane.f32.xlu2 %v446_v9 }
 0x323   : > { %v443_v10 = vpop.f32.mrf.mxu2 }
 0x325   : > { %v647_v11 = vpop.f32.mrf.mxu0 }
 0x326   : > { %v651_v12 = vmul.f32 %v647_v11, %v1219_v3 }
 0x328   : > { %v652_v13 = vsel %vm322_vm0, %v651_v12, -inf }
 0x329   : > { %653 = vmax.xlane.f32.xlu1 %v652_v13 }
 0x32d   : > { %v649_v14 = vpop.f32.mrf.mxu0 }
 0x32e   : > { %v415_v14 = vld [vmem:[%s1255_s11] sm:$0xf] }
 0x388   : > { %v1284_v15 = vpop.f32.mrf.mxu1 }
 0x390   : > { %v411_v16 = vpop.f32.mrf.mxu1 }
 0x391   : > { %v493_v16 = vunpack.c.l.b16 %v415_v14 }
 0x392   : > { %v448_v17 = vpop.xlane.xlu2 %447 }
 0x393   : > { %v449_v18 = vsub.f32 %v445_v8, %v448_v17  ;;  %v494_v17 = vpack.c.b16 %v493_v16, %v493_v16 }
 0x395   : > { %v450_v19 = vmul.f32 1.442695, %v449_v18 }
 0x397   : > { %1010 = vpow2.f32 %v450_v19 }
 0x398   : > { %v544_v20 = vpop.f32.mrf.mxu1 }
 0x399   : > { %v548_v21 = vmul.f32 %v544_v20, %v1219_v3 }
 0x39b   : > { %v549_v22 = vsel %vm322_vm0, %v548_v21, -inf }
 0x39c   : > { %550 = vmax.xlane.f32.xlu0 %v549_v22  ;;  %v654_v23 = vpop.xlane.xlu1 %653 }
 0x39d   : > { %v1011_v24 = vpop.eup %1010  ;;  %v655_v25 = vsub.f32 %v651_v12, %v654_v23  ;;  %v518_v23 = vld [vmem:[%s1255_s11] sm:$0xf] }
 0x39e   : > { %v452_v26 = vsel %vm322_vm0, %v1011_v24, 0.0 }
 0x39f   : > { %v656_v27 = vmul.f32 1.442695, %v655_v25  ;;  %453 = vadd.xlane.f32.xlu2 %v452_v26  ;;  %v596_v25 = vunpack.c.l.b16 %v518_v23 }
 0x3a0   : > { %v546_v28 = vpop.f32.mrf.mxu1 }
 0x3a1   : > { %1012 = vpow2.f32 %v656_v27  ;;  %v597_v26 = vpack.c.b16 %v596_v25, %v596_v25 }
 0x3a7   : > { %v1013_v29 = vpop.eup %1012 }
 0x3a8   : > { %v658_v30 = vsel %vm322_vm0, %v1013_v29, 0.0 }
 0x3a9   : > { %659 = vadd.xlane.f32.xlu2 %v658_v30 }
 0x40f   : > { %v551_v31 = vpop.xlane.xlu0 %550 }
 0x410   : > { %v552_v32 = vsub.f32 %v548_v21, %v551_v31 }
 0x412   : > { %v553_v33 = vmul.f32 1.442695, %v552_v32  ;;  %v454_v3 = vpop.xlane.xlu2 %453 }
 0x413   : > { %1014 = vrcp.f32 %v454_v3  ;;  %v466_v40 = vand.u32 2147483648, %v454_v3  ;;  %v464_v42 = vand.u32 2147483647, %v454_v3  ;;  %vm460_vm10 = vweird.f32 %v454_v3 }
 0x414   : > { %1016 = vpow2.f32 %v553_v33 }
 0x415   : > { %v467_v44 = vor.u32 1.1754944e-38, %v466_v40  ;;  %vm465_vm12 = vcmp.eq.f32.partialorder %v464_v42, 8.507059e+37 }
 0x419   : > { %v1015_v34 = vpop.eup %1014 }
 0x41a   : > { %v1017_v35 = vpop.eup %1016  ;;  %v456_v36 = vmul.f32 %v1015_v34, %v454_v3  ;;  %vm461_vm9 = vweird.f32 %v1015_v34 }
 0x41b   : > { %v555_v37 = vsel %vm322_vm0, %v1017_v35, 0.0  ;;  %vm462_vm11 = vmor %vm460_vm10, %vm461_vm9 }
 0x41c   : > { %v457_v38 = vsub.f32 1.0, %v456_v36  ;;  %556 = vadd.xlane.f32.xlu0 %v555_v37  ;;  %v660_v39 = vpop.xlane.xlu2 %659 }
 0x41d   : > { %1018 = vrcp.f32 %v660_v39  ;;  %v672_v50 = vand.u32 2147483648, %v660_v39  ;;  %vm666_vm13 = vweird.f32 %v660_v39  ;;  %v670_v52 = vand.u32 2147483647, %v660_v39 }
 0x41e   : > { %v458_v41 = vmul.f32 %v1015_v34, %v457_v38 }
 0x41f   : > { %v673_v54 = vor.u32 1.1754944e-38, %v672_v50  ;;  %vm671_vm1 = vcmp.eq.f32.partialorder %v670_v52, 8.507059e+37 }
 0x420   : > { %v459_v43 = vadd.f32 %v1015_v34, %v458_v41 }
 0x422   : > { %v463_v45 = vsel %vm462_vm11, %v1015_v34, %v459_v43 }
 0x423   : > { %v1019_v46 = vpop.eup %1018  ;;  %v468_v47 = vsel %vm465_vm12, %v467_v44, %v463_v45 }
 0x424   : > { %v662_v48 = vmul.f32 %v1019_v46, %v660_v39  ;;  %v1291_v49 = vmul.f32 %v1011_v24, %v468_v47  ;;  %vm667_vm14 = vweird.f32 %v1019_v46 }
 0x425   : > { %vm668_vm15 = vmor %vm666_vm13, %vm667_vm14 }
 0x426   : > { %v663_v51 = vsub.f32 1.0, %v662_v48  ;;  %471 = vrot.lane.b32.xlu1 %v1291_v49, %s1404_s17 }
 0x428   : > { %v664_v53 = vmul.f32 %v1019_v46, %v663_v51 }
 0x42a   : > { %v665_v55 = vadd.f32 %v1019_v46, %v664_v53 }
 0x42c   : > { %v669_v56 = vsel %vm668_vm15, %v1019_v46, %v665_v55 }
 0x42d   : > { %v674_v57 = vsel %vm671_vm1, %v673_v54, %v669_v56 }
 0x42e   : > { %v1295_v58 = vmul.f32 %v1013_v29, %v674_v57  ;;  %v621_v29 = vld [vmem:[%s1255_s11] sm:$0xf] }
 0x42f   : > { %v699_v32 = vunpack.c.l.b16 %v621_v29 }
 0x430   : > { %677 = vrot.lane.b32.xlu2 %v1295_v58, %s1404_s17 }
 0x431   : > { %v700_v33 = vpack.c.b16 %v699_v32, %v699_v32 }
 0x48a   : > { %v678_v59 = vpop.permute.xlu2 %677 }
 0x48b   : > { %v679_v62 = vsel %vm368_vm5, %v678_v59, %v1295_v58 }
 0x48c   : > { %680 = vrot.lane.b32.xlu2 %v679_v62, %s1404_s17 }
 0x48f   : > { %v557_v63 = vpop.xlane.xlu0 %556 }
 0x490   : > { %1020 = vrcp.f32 %v557_v63  ;;  %v569_v4 = vand.u32 2147483648, %v557_v63  ;;  %v567_v6 = vand.u32 2147483647, %v557_v63  ;;  %vm563_vm3 = vweird.f32 %v557_v63 }
 0x492   : > { %v570_v8 = vor.u32 1.1754944e-38, %v569_v4  ;;  %vm568_vm9 = vcmp.eq.f32.partialorder %v567_v6, 8.507059e+37 }
 0x494   : > { %495 = vrot.lane.b32.xlu2 %v494_v17, %s1103_s24 }
 0x496   : > { %v1021_v0 = vpop.eup %1020 }
 0x497   : > { %v559_v1 = vmul.f32 %v1021_v0, %v557_v63  ;;  %vm564_vm2 = vweird.f32 %v1021_v0 }
 0x498   : > { %vm565_vm4 = vmor %vm563_vm3, %vm564_vm2  ;;  %v472_v12 = vpop.permute.xlu1 %471 }
 0x499   : > { %v560_v2 = vsub.f32 1.0, %v559_v1  ;;  %v473_v13 = vsel %vm368_vm5, %v472_v12, %v1291_v49 }
 0x49b   : > { %v561_v5 = vmul.f32 %v1021_v0, %v560_v2 }
 0x49d   : > { %v562_v7 = vadd.f32 %v1021_v0, %v561_v5 }
 0x49f   : > { %v566_v9 = vsel %vm565_vm4, %v1021_v0, %v562_v7 }
 0x4a0   : > { %v571_v10 = vsel %vm568_vm9, %v570_v8, %v566_v9 }
 0x4a1   : > { %v573_v11 = vmul.f32 %v1017_v35, %v571_v10 }
 0x4a3   : > { %574 = vrot.lane.b32.xlu0 %v573_v11, %s1404_s17 }
 0x4ab   : > { %474 = vrot.lane.b32.xlu0 %v473_v13, %s1404_s17 }
 0x4e6   : > { %v681_v22 = vpop.permute.xlu2 %680 }
 0x4e7   : > { %v682_v24 = vsel %vm368_vm5, %v681_v22, %v1295_v58 }
 0x4ee   : > { %v496_v27 = vpop.permute.xlu2 %495 }
 0x4ef   : > { %v501_v28 = vsel %vm396_vm6, %v496_v27, 0 }
 0x4f0   : > { %510 = vmatpush.bf16.msra.mxu3 %v501_v28 }
 0x515   : > { %v575_v18 = vpop.permute.xlu0 %574 }
 0x516   : > { %v576_v19 = vsel %vm368_vm5, %v575_v18, %v573_v11 }
 0x517   : > { %577 = vrot.lane.b32.xlu1 %v576_v19, %s1404_s17 }
 0x51d   : > { %v475_v20 = vpop.permute.xlu0 %474 }
 0x51e   : > { %v476_v21 = vsel %vm368_vm5, %v475_v20, %v1291_v49 }
 0x51f   : > { %483 = vrot.lane.b32.xlu1 %v476_v21, %s1105_s27  ;;  %478 = vrot.lane.b32.xlu0 %v476_v21, %s1106_s29 }
 0x527   : > { %684 = vrot.lane.b32.xlu1 %v682_v24, %s1106_s29 }
 0x52f   : > { %598 = vrot.lane.b32.xlu1 %v597_v26, %s1107_s7  ;;  %s750_s7 = scalar_lea.sflag [#allocation3], %s286_s12 }
 0x589   : > { %v578_v30 = vpop.permute.xlu1 %577 }
 0x58a   : > { %v579_v31 = vsel %vm368_vm5, %v578_v30, %v573_v11 }
 0x58b   : > { %586 = vrot.lane.b32.xlu2 %v579_v31, %s1105_s27  ;;  %581 = vrot.lane.b32.xlu0 %v579_v31, %s1106_s29 }
 0x591   : > { %v479_v3 = vpop.permute.xlu0 %478  ;;  %v484_v34 = vpop.permute.xlu1 %483 }
 0x592   : > { %v481_v35 = vsel %vm376_vm7, %v479_v3, 0.0  ;;  %v486_v37 = vsel %vm384_vm8, %v484_v34, 0.0 }
 0x593   : > { %v482_v36 = vadd.f32 %v481_v35, %v1291_v49  ;;  %689 = vrot.lane.b32.xlu0 %v682_v24, %s1105_s27  ;;  %701 = vrot.lane.b32.xlu2 %v700_v33, %s1104_s25  ;;  %s765_s27 = scalar_lea.hbm %s1403_s5, %s941_s16 }
 0x594   : > { %s768_s29 = sshll.u32 %s765_s27, 4  ;;  %s769_s29 = int_to_ptr.hbm [resolvable:$true] %s768_s29 }
 0x595   : > { %v487_v38 = vadd.f32 %v486_v37, %v482_v36  ;;  %s1036_s9 = sshra.s32 %s769_s29, 4  ;;  %s1037_s9 = int_to_ptr.hbm [resolvable:$true] %s1036_s9 }
 0x596   : > { %s1038_s10 = scalar_lea.hbm %s1037_s9, 32  ;;  %p1043_p1 = scmp.lt.s32.totalorder %s1037_s9, %s1403_s5 }
 0x597   : > { %v488_v39 = vmul.f32 0.33333334, %v487_v38  ;;  %p1039_p12 = scmp.ne.s32.totalorder %s1037_s9, %s1038_s10  ;;  %p1044_p2 = scmp.lt.s32.totalorder %s1042_s21, %s1038_s10 }
 0x599   : > { %928 = vst.msk [vmem:[%s1274_s14 + $0x8] sm:$0xff] %vm322_vm0, %v488_v39  ;;  %v491_v40 = vpack.c.bf16 %v488_v39, %v488_v39  ;;  %v685_v41 = vpop.permute.xlu1 %684  ;;  %p1040_p13 = pnand %p1039_p12, %p1181_p4  ;;  %p1045_p3 = por %p1044_p2, %p1043_p1 }
 0x59a   : > { %v687_v52 = vsel %vm376_vm7, %v685_v41, 0.0 }
 0x59b   : > { %929 = vmatmul.msk.bf16.vlgmr.msra.gmra.mxu3 %vm322_vm0, %v491_v40  ;;  %v688_v54 = vadd.f32 %v687_v52, %v1295_v58  ;;  %p1041_p0 = pneg %p1040_p13 }
 0x59d   : > { %p1046_p5 = pnand %p1045_p3, %p1041_p0 }
 0x5a1   : > { %v599_v42 = vpop.permute.xlu1 %598 }
 0x5a2   : > { %v604_v43 = vsel %vm396_vm6, %v599_v42, 0 }
 0x5a3   : > { %613 = vmatpush.bf16.msrb.mxu3 %v604_v43 }
 0x5e5   : > { %v587_v44 = vpop.permute.xlu2 %586 }
 0x5e6   : > { %v589_v50 = vsel %vm384_vm8, %v587_v44, 0.0 }
 0x5ed   : > { %v702_v45 = vpop.permute.xlu2 %701 }
 0x5ee   : > { %v707_v46 = vsel %vm396_vm6, %v702_v45, 0 }
 0x5ef   : > { %716 = vmatpush.bf16.msrb.mxu2 %v707_v46 }
 0x5fd   : > { %v582_v47 = vpop.permute.xlu0 %581 }
 0x5fe   : > { %v584_v48 = vsel %vm376_vm7, %v582_v47, 0.0 }
 0x5ff   : > { %v585_v49 = vadd.f32 %v584_v48, %v573_v11 }
 0x601   : > { %v590_v51 = vadd.f32 %v589_v50, %v585_v49 }
 0x603   : > { %v591_v53 = vmul.f32 0.33333334, %v590_v51 }
 0x605   : > { %931 = vst.msk [vmem:[%s1274_s14 + $0x10] sm:$0xff] %vm322_vm0, %v591_v53  ;;  %v594_v55 = vpack.c.bf16 %v591_v53, %v591_v53  ;;  %v690_v56 = vpop.permute.xlu0 %689 }
 0x606   : > { %v692_v57 = vsel %vm384_vm8, %v690_v56, 0.0 }
 0x607   : > { %v693_v59 = vadd.f32 %v692_v57, %v688_v54  ;;  %932 = vmatmul.msk.bf16.vlgmr.msrb.gmra.mxu3 %vm322_vm0, %v594_v55 }
 0x609   : > { %v694_v62 = vmul.f32 0.33333334, %v693_v59 }
 0x60b   : > { %934 = vst.msk [vmem:[%s1274_s14 + $0x18] sm:$0xff] %vm322_vm0, %v694_v62  ;;  %v697_v60 = vpack.c.bf16 %v694_v62, %v694_v62 }
 0x60d   : > { %935 = vmatmul.msk.bf16.vlgmr.msrb.gmra.mxu2 %vm322_vm0, %v697_v60 }
 0x61e   : > { %v512_v63 = vpop.f32.mrf.mxu3 }
 0x61f   : > { %723 = vrot.lane.b32.xlu0 %v512_v63, %s1404_s17 }
 0x626   : > { %v514_v58 = vpop.f32.mrf.mxu3 }
 0x627   : > { %1049 = shalt.err (!%p1046_p5)
}
 0x628   : > { %s1108_s12 = smov 128   ;;  %s1407_s16 = smov 8   ;;  %vm735_vm5 = vcmask 130048   ;;  %vm737_vm6 = vcmask 195584   ;;  %vm740_vm7 = vcmask 257024  }
 0x629   : > { %942 = dma.vmem_to_hbm [thread:$0]  (%p1181_p4), %s767_s15, 512, %s769_s29, %s750_s7, %s1108_s12, %s1108_s12, %s1407_s16  }
 0x62a   : > { %s1109_s24 = smov 16   ;;  %s1110_s25 = smov 24  }
 0x62b   : > { %s314_s15 = scalar_lea.vmem %s1402_s4, %s1198_s8 }
 0x68a   : > { %v615_v61 = vpop.f32.mrf.mxu3 }
 0x68b   : > { %727 = vrot.lane.b32.xlu1 %v615_v61, %s1109_s24 }
 0x690   : > { %v718_v0 = vpop.f32.mrf.mxu2 }
 0x691   : > { %731 = vrot.lane.b32.xlu2 %v718_v0, %s1110_s25  ;;  %v724_v4 = vpop.permute.xlu0 %723 }
 0x692   : > { %v617_v1 = vpop.f32.mrf.mxu3  ;;  %v734_v5 = vsel %vm322_vm0, %v1284_v15, %v724_v4 }
 0x698   : > { %v720_v2 = vpop.f32.mrf.mxu2 }
 0x6eb   : > { %v732_v7 = vpop.permute.xlu2 %731 }
 0x6fd   : > { %v728_v6 = vpop.permute.xlu1 %727 }
 0x6fe   : > { %v736_v8 = vsel %vm735_vm5, %v734_v5, %v728_v6 }
 0x6ff   : > { %v738_v9 = vsel %vm737_vm6, %v736_v8, %v732_v7 }
 0x700   : > { %v739_v10 = vpack.c.bf16 %v738_v9, %v738_v9 }
 0x702   : > { %741 = vst.msk [vmem:[%s314_s15] sm:$0xf] %vm740_vm7, %v739_v10 }
 0x703 PF: > { %p948_p4 = scmp.ge.s32.totalorder %s1100_s23, 2  ;;  %s793_s27 = sand.u32 1, %s1080_s18  }
 0x704   : > { %s794_s29 = scalar_lea.sflag [#allocation3], %s793_s27 }
 0x705   : > { %p945_p6 = pnand %p948_p4, %p1188_p8 }
 0x707   : > { %p946_p7 = pneg %p945_p6 }
 0x709   : > { %1075 = dma.done.wait (%p946_p7), %s794_s29, 512  }
 0x70a   : > { %1077 = vsyncadd (%p946_p7), %s794_s29, 4294966784  ;;  %s19_s23 = sadd.s32 1, %s1100_s23   ;;  %s1408_s18 = smov %s1084_s19 }
 0x70b   : > { %p16_p9 = scmp.ge.s32.totalorder %s19_s23, 4   ;;  %s1409_s19 = smov %s1088_s20 }
 0x70c   : > { %s1410_s20 = smov %s1194_s6  ;;  %s1411_s21 = smov %s1096_s22 }
 0x70d   : > { %s1412_s22 = smov %s1414_s26  ;;  %18 = sbr.rel (!%p16_p9) target bundleno = 4 (0x4), region = 95 }
 0x712   :  { %800 = vsyncpa [#allocation3], 1 }
 0x713   :  { %802 = vsyncpa [#allocation3 + $0x1], 1 }

// kernel: decoder_layer.11
= control target key start
LH: loop header
LB: loop body
LE: loop exit
PB: predicated region body
PF: predicated region fallthrough
CT: control target
= control target key end

     0   :  { %7 = vsyncpa [#allocation3], 0  ;;  %s115_s12 = smov [#allocation2]   ;;  %s116_s14 = smov 64   ;;  %s148_s0 = inlined_call_operand.vmem [shape: f32[16,32], index: 0, kind: input, shape index: {}]   ;;  %s149_s1 = inlined_call_operand.hbm [shape: bf16[32,32], index: 1, kind: input, shape index: {}]   ;;  %s150_s2 = inlined_call_operand.vmem [shape: bf16[16,32], index: 2, kind: output, shape index: {}]  }
   0x1   :  { %s14_s11 = sshll.u32 %s149_s1, 4  ;;  %s16_s13 = sshll.u32 %s115_s12, 4  ;;  %s15_s11 = int_to_ptr.hbm [resolvable:$true] %s14_s11  ;;  %s17_s13 = int_to_ptr.vmem [resolvable:$true] %s16_s13 }
   0x2   :  { %s117_s15 = smov 4  }
   0x3   :  { %22 = dma.hbm_to_vmem [thread:$0]  %s15_s11, 256, %s17_s13, [#allocation3], %s116_s14, %s116_s14, %s117_s15  }
   0x4   :  { %113 = dma.done.wait [#allocation3], 256  }
   0x5   :  { %114 = vsyncadd [#allocation3], 4294967040  ;;  %v85_v0 = vld [vmem:[#allocation2 + $0x8] sm:$0xff]  ;;  %v84_v1 = vld [vmem:[#allocation2] sm:$0xff]  ;;  %vm47_vm0 = vcmask 261120   ;;  %vm67_vm1 = vcmask 257024  }
   0x6   :  { %57 = vmatpush.bf16.msra.mxu0 %v85_v0  ;;  %v28_v2 = vld [vmem:[%s148_s0] sm:$0xff]  ;;  %v29_v3 = vld [vmem:[%s148_s0 + $0x8] sm:$0xff] }
   0x7   :  { %v30_v4 = vpack.c.bf16 %v29_v3, %v28_v2 }
   0xa   :  { %58 = vmatpush.bf16.msra.mxu0 %v84_v1 }
   0xd   :  { %83 = vmatmul.msk.bf16.vlgmr.msra.gmra.mxu0 %vm47_vm0, %v30_v4 }
  0x8a   :  { %v60_v5 = vpop.f32.mrf.mxu0 }
  0x8b   :  { %v65_v6 = vpack.c.bf16 %v60_v5, %v60_v5 }
  0x8d   :  { %68 = vst.msk [vmem:[%s150_s2] sm:$0xf] %vm67_vm1, %v65_v6 }
  0x92   :  { %v62_v7 = vpop.f32.mrf.mxu0 }
  0x93   :  { %v66_v8 = vpack.c.bf16 %v62_v7, %v62_v7 }
  0x95   :  { %69 = vst.msk [vmem:[%s150_s2 + $0x4] sm:$0xf] %vm67_vm1, %v66_v8 }
  0x96   :  { %74 = vsyncpa [#allocation3], 1 }

// kernel: decoder_layer.12
= control target key start
LH: loop header
LB: loop body
LE: loop exit
PB: predicated region body
PF: predicated region fallthrough
CT: control target
= control target key end

     0   :  { %9 = vsyncpa [#allocation3], 0  ;;  %s223_s0 = inlined_call_operand.hbm [shape: f32[16,32], index: 0, kind: input, shape index: {}]   ;;  %s224_s1 = inlined_call_operand.hbm [shape: bf16[32,64], index: 1, kind: input, shape index: {}]   ;;  %s225_s2 = inlined_call_operand.vmem [shape: bf16[16,32], index: 2, kind: output, shape index: {0}]   ;;  %s226_s3 = inlined_call_operand.vmem [shape: bf16[16,32], index: 3, kind: output, shape index: {1}]  }
   0x1   :  { %s15_s14 = sshll.u32 %s223_s0, 4  ;;  %s16_s14 = int_to_ptr.hbm [resolvable:$true] %s15_s14 }
   0x2   :  { %10 = vsyncpa [#allocation5], 0  ;;  %s178_s15 = smov [#allocation2]   ;;  %s28_s19 = sshll.u32 %s224_s1, 4  ;;  %s29_s19 = int_to_ptr.hbm [resolvable:$true] %s28_s19 }
   0x3   :  { %s17_s16 = sshll.u32 %s178_s15, 4  ;;  %s179_s20 = smov 128   ;;  %s18_s16 = int_to_ptr.vmem [resolvable:$true] %s17_s16 }
   0x4   :  { %s180_s21 = smov 8   ;;  %s181_s22 = smov [#allocation4]  }
   0x5   :  { %23 = dma.hbm_to_vmem [thread:$0]  %s16_s14, 256, %s18_s16, [#allocation3], %s179_s20, %s179_s20, %s180_s21  }
   0x6   :  { %s30_s23 = sshll.u32 %s181_s22, 4  ;;  %s182_s24 = smov 64   ;;  %s31_s23 = int_to_ptr.vmem [resolvable:$true] %s30_s23 }
   0x7   :  { %s183_s25 = smov 4  }
   0x8   :  { %36 = dma.hbm_to_vmem [thread:$0]  %s29_s19, 256, %s31_s23, [#allocation5], %s182_s24, %s182_s24, %s183_s25  }
   0x9   :  { %174 = dma.done.wait [#allocation3], 256  }
   0xa   :  { %175 = vsyncadd [#allocation3], 4294967040 }
   0xb   :  { %176 = dma.done.wait [#allocation5], 256  }
   0xc   :  { %177 = vsyncadd [#allocation5], 4294967040  ;;  %v118_v0 = vld [vmem:[#allocation4 + $0x8] sm:$0xff]  ;;  %v117_v1 = vld [vmem:[#allocation4] sm:$0xff]  ;;  %vm65_vm0 = vcmask 261120   ;;  %vm85_vm1 = vcmask 257024  }
   0xd   :  { %75 = vmatpush.bf16.msra.mxu0 %v118_v0  ;;  %v46_v2 = vld [vmem:[#allocation2] sm:$0xff]  ;;  %v47_v3 = vld [vmem:[#allocation2 + $0x8] sm:$0xff]  ;;  %s184_s26 = smov 96  }
   0xe   :  { %v48_v4 = vpack.c.bf16 %v47_v3, %v46_v2 }
  0x11   :  { %76 = vmatpush.bf16.msra.mxu0 %v117_v1 }
  0x14   :  { %116 = vmatmul.msk.bf16.vlgmr.msra.gmra.mxu0 %vm65_vm0, %v48_v4 }
  0x91   :  { %v78_v5 = vpop.f32.mrf.mxu0 }
  0x92   :  { %v83_v6 = vpack.c.bf16 %v78_v5, %v78_v5 }
  0x94   :  { %86 = vst.msk [vmem:[%s225_s2] sm:$0xf] %vm85_vm1, %v83_v6  ;;  %90 = vrot.lane.b32.xlu0 %v83_v6, %s184_s26 }
  0x99   :  { %v80_v7 = vpop.f32.mrf.mxu0 }
  0x9a   :  { %v84_v8 = vpack.c.bf16 %v80_v7, %v80_v7 }
  0x9c   :  { %87 = vst.msk [vmem:[%s225_s2 + $0x4] sm:$0xf] %vm85_vm1, %v84_v8  ;;  %92 = vrot.lane.b32.xlu0 %v84_v8, %s184_s26 }
 0x106   :  { %v91_v9 = vpop.permute.xlu0 %90 }
 0x107   :  { %96 = vst.msk [vmem:[%s226_s3] sm:$0xf] %vm85_vm1, %v91_v9 }
 0x10e   :  { %v93_v10 = vpop.permute.xlu0 %92 }
 0x10f   :  { %97 = vst.msk [vmem:[%s226_s3 + $0x4] sm:$0xf] %vm85_vm1, %v93_v10 }
 0x110   :  { %106 = vsyncpa [#allocation3], 1 }
 0x111   :  { %107 = vsyncpa [#allocation5], 1 }

// kernel: decoder_layer.14
= control target key start
LH: loop header
LB: loop body
LE: loop exit
PB: predicated region body
PF: predicated region fallthrough
CT: control target
= control target key end

     0   :  { %10 = vsyncpa [#allocation3], 0  ;;  %s206_s21 = smov [#allocation2]   ;;  %s207_s23 = smov 64   ;;  %s271_s0 = inlined_call_operand.vmem [shape: bf16[16,32], index: 0, kind: input, shape index: {}]   ;;  %s272_s1 = inlined_call_operand.hbm [shape: bf16[32,32], index: 1, kind: input, shape index: {}]   ;;  %s273_s2 = inlined_call_operand.vmem [shape: f32[16,32], index: 2, kind: input, shape index: {}]   ;;  %s274_s3 = inlined_call_operand.vmem [shape: f32[1,32], index: 3, kind: input, shape index: {}]   ;;  %s275_s4 = inlined_call_operand.vmem [shape: f32[1,32], index: 4, kind: input, shape index: {}]   ;;  %s276_s5 = inlined_call_operand.vmem [shape: f32[16,32], index: 5, kind: output, shape index: {}]  }
   0x1   :  { %s17_s20 = sshll.u32 %s272_s1, 4  ;;  %s19_s22 = sshll.u32 %s206_s21, 4  ;;  %s18_s20 = int_to_ptr.hbm [resolvable:$true] %s17_s20  ;;  %s20_s22 = int_to_ptr.vmem [resolvable:$true] %s19_s22 }
   0x2   :  { %s208_s24 = smov 4  }
   0x3   :  { %25 = dma.hbm_to_vmem [thread:$0]  %s18_s20, 256, %s20_s22, [#allocation3], %s207_s23, %s207_s23, %s208_s24  }
   0x4   :  { %204 = dma.done.wait [#allocation3], 256  }
   0x5   :  { %205 = vsyncadd [#allocation3], 4294967040  ;;  %v167_v0 = vld [vmem:[#allocation2 + $0x8] sm:$0xff]  ;;  %v166_v1 = vld [vmem:[#allocation2] sm:$0xff]  ;;  %vm62_vm0 = vcmask 261120   ;;  %v209_v11 = vmov 32.0  }
   0x6   :  { %72 = vmatpush.bf16.msra.mxu0 %v167_v0  ;;  %v165_v2 = vld [vmem:[%s271_s0] sm:$0xff]  ;;  %v38_v7 = vld [vmem:[%s273_s2 + $0x8] sm:$0xff]  ;;  %174 = vrcp.f32 %v209_v11 }
   0x7   :  { %v37_v3 = vld [vmem:[%s273_s2] sm:$0xff] }
   0x8   :  { %v172_v42 = vld [vmem:[%s274_s3] ss:$0 sm:$0xff] }
   0x9   :  { %v173_v45 = vld [vmem:[%s275_s4] ss:$0 sm:$0xff] }
   0xa   :  { %73 = vmatpush.bf16.msra.mxu0 %v166_v1 }
   0xc   :  { %v175_v12 = vpop.eup %174 }
   0xd   :  { %164 = vmatmul.msk.bf16.vlgmr.msra.gmra.mxu0 %vm62_vm0, %v165_v2  ;;  %v89_v13 = vmul.f32 32.0, %v175_v12  ;;  %vm93_vm1 = vweird.f32 %v175_v12 }
   0xf   :  { %v90_v14 = vsub.f32 1.0, %v89_v13 }
  0x11   :  { %v91_v15 = vmul.f32 %v175_v12, %v90_v14 }
  0x13   :  { %v92_v16 = vadd.f32 %v175_v12, %v91_v15 }
  0x15   :  { %v94_v17 = vsel %vm93_vm1, %v175_v12, %v92_v16 }
  0x8a   :  { %v75_v4 = vpop.f32.mrf.mxu0 }
  0x8b   :  { %v80_v5 = vadd.f32 %v75_v4, %v37_v3 }
  0x8d   :  { %v82_v6 = vsel %vm62_vm0, %v80_v5, 0.0 }
  0x8e   :  { %83 = vadd.xlane.f32.xlu0 %v82_v6 }
  0x92   :  { %v77_v8 = vpop.f32.mrf.mxu0 }
  0x93   :  { %v81_v9 = vadd.f32 %v77_v8, %v38_v7 }
  0x95   :  { %v85_v10 = vsel %vm62_vm0, %v81_v9, 0.0 }
  0x96   :  { %86 = vadd.xlane.f32.xlu0 %v85_v10 }
 0x101   :  { %v84_v18 = vpop.xlane.xlu0 %83 }
 0x102   :  { %v95_v19 = vmul.f32 %v94_v17, %v84_v18 }
 0x104   :  { %v97_v20 = vsub.f32 %v80_v5, %v95_v19 }
 0x106   :  { %v99_v21 = vmul.f32 %v97_v20, %v97_v20 }
 0x108   :  { %v101_v22 = vsel %vm62_vm0, %v99_v21, 0.0 }
 0x109   :  { %102 = vadd.xlane.f32.xlu1 %v101_v22  ;;  %v87_v23 = vpop.xlane.xlu0 %86 }
 0x10a   :  { %v96_v24 = vmul.f32 %v94_v17, %v87_v23 }
 0x10c   :  { %v98_v25 = vsub.f32 %v81_v9, %v96_v24 }
 0x10e   :  { %v100_v26 = vmul.f32 %v98_v25, %v98_v25 }
 0x110   :  { %v104_v27 = vsel %vm62_vm0, %v100_v26, 0.0 }
 0x111   :  { %105 = vadd.xlane.f32.xlu1 %v104_v27 }
 0x17c   :  { %v103_v28 = vpop.xlane.xlu1 %102 }
 0x17d   :  { %v107_v29 = vmul.f32 %v103_v28, %v94_v17 }
 0x17f   :  { %v109_v30 = vadd.f32 1e-06, %v107_v29 }
 0x181   :  { %176 = vrsqrt.f32 %v109_v30  ;;  %vm117_vm3 = vweird.f32 %v109_v30 }
 0x184   :  { %v106_v31 = vpop.xlane.xlu1 %105 }
 0x185   :  { %v108_v32 = vmul.f32 %v106_v31, %v94_v17 }
 0x187   :  { %v177_v33 = vpop.eup %176  ;;  %v110_v34 = vadd.f32 1e-06, %v108_v32 }
 0x188   :  { %v112_v35 = vmul.f32 %v177_v33, %v109_v30  ;;  %vm118_vm2 = vweird.f32 %v177_v33 }
 0x189   :  { %178 = vrsqrt.f32 %v110_v34  ;;  %vm119_vm4 = vmor %vm117_vm3, %vm118_vm2  ;;  %vm127_vm6 = vweird.f32 %v110_v34 }
 0x18a   :  { %v113_v36 = vmul.f32 %v177_v33, %v112_v35 }
 0x18c   :  { %v114_v37 = vmul.f32 0.5, %v113_v36 }
 0x18e   :  { %v115_v38 = vsub.f32 1.5, %v114_v37 }
 0x18f   :  { %v179_v39 = vpop.eup %178 }
 0x190   :  { %v116_v40 = vmul.f32 %v177_v33, %v115_v38  ;;  %v122_v41 = vmul.f32 %v179_v39, %v110_v34  ;;  %vm128_vm5 = vweird.f32 %v179_v39 }
 0x191   :  { %vm129_vm7 = vmor %vm127_vm6, %vm128_vm5 }
 0x192   :  { %v120_v43 = vsel %vm119_vm4, %v177_v33, %v116_v40  ;;  %v123_v44 = vmul.f32 %v179_v39, %v122_v41 }
 0x193   :  { %v131_v46 = vmul.f32 %v120_v43, %v97_v20 }
 0x194   :  { %v124_v47 = vmul.f32 0.5, %v123_v44 }
 0x195   :  { %v137_v48 = vmul.f32 %v172_v42, %v131_v46 }
 0x196   :  { %v125_v49 = vsub.f32 1.5, %v124_v47 }
 0x197   :  { %v143_v50 = vadd.f32 %v173_v45, %v137_v48 }
 0x198   :  { %v126_v51 = vmul.f32 %v179_v39, %v125_v49 }
 0x199   :  { %145 = vst.msk [vmem:[%s276_s5] sm:$0xff] %vm62_vm0, %v143_v50 }
 0x19a   :  { %v130_v52 = vsel %vm129_vm7, %v179_v39, %v126_v51 }
 0x19b   :  { %v132_v53 = vmul.f32 %v130_v52, %v98_v25 }
 0x19d   :  { %v138_v54 = vmul.f32 %v172_v42, %v132_v53 }
 0x19f   :  { %v144_v55 = vadd.f32 %v173_v45, %v138_v54 }
 0x1a1   :  { %146 = vst.msk [vmem:[%s276_s5 + $0x8] sm:$0xff] %vm62_vm0, %v144_v55 }
 0x1a2   :  { %151 = vsyncpa [#allocation3], 1 }

// kernel: decoder_layer.15
= control target key start
LH: loop header
LB: loop body
LE: loop exit
PB: predicated region body
PF: predicated region fallthrough
CT: control target
= control target key end

     0   :  { %s373_s0 = inlined_call_operand.vmem [shape: f32[16,32], index: 0, kind: input, shape index: {}]   ;;  %s374_s1 = inlined_call_operand.vmem [shape: bf16[32,64], index: 1, kind: input, shape index: {}]   ;;  %s375_s2 = inlined_call_operand.vmem [shape: f32[1,64], index: 2, kind: input, shape index: {}]   ;;  %s376_s3 = inlined_call_operand.vmem [shape: bf16[64,32], index: 3, kind: input, shape index: {}]   ;;  %s377_s4 = inlined_call_operand.vmem [shape: f32[1,32], index: 4, kind: input, shape index: {}]   ;;  %s378_s5 = inlined_call_operand.vmem [shape: f32[1,32], index: 5, kind: input, shape index: {}]   ;;  %s379_s6 = inlined_call_operand.vmem [shape: f32[1,32], index: 6, kind: input, shape index: {}]   ;;  %s380_s7 = inlined_call_operand.hbm [shape: f32[16,32], index: 7, kind: output, shape index: {}]  }
   0x1   :  { %v238_v0 = vld [vmem:[%s374_s1 + $0x8] sm:$0xff]  ;;  %v237_v1 = vld [vmem:[%s374_s1] sm:$0xff] }
   0x2   :  { %v28_v2 = vld [vmem:[%s373_s0] sm:$0xff]  ;;  %v29_v3 = vld [vmem:[%s373_s0 + $0x8] sm:$0xff]  ;;  %61 = vmatpush.bf16.msra.mxu0 %v238_v0 }
   0x3   :  { %12 = vsyncpa [#allocation3], 0  ;;  %v30_v4 = vpack.c.bf16 %v29_v3, %v28_v2  ;;  %vm51_vm0 = vcmask 261120   ;;  %v242_v5 = vld [vmem:[%s376_s3 + $0x18] sm:$0xff]  ;;  %v241_v6 = vld [vmem:[%s376_s3 + $0x10] sm:$0xff]  ;;  %vm108_vm1 = vcmask 523264  }
   0x4   :  { %116 = vmatpush.bf16.msra.mxu1 %v242_v5  ;;  %v240_v7 = vld [vmem:[%s376_s3 + $0x8] sm:$0xff]  ;;  %v239_v8 = vld [vmem:[%s376_s3] sm:$0xff]  ;;  %v283_v26 = vmov 32.0   ;;  %s199_s23 = sshll.u32 %s380_s7, 4  ;;  %s286_s24 = smov 8   ;;  %s200_s23 = int_to_ptr.hbm [resolvable:$true] %s199_s23 }
   0x5   :  { %v247_v10 = vld [vmem:[%s375_s2] ss:$0 sm:$0xff]  ;;  %251 = vrcp.f32 %v283_v26 }
   0x6   :  { %62 = vmatpush.bf16.msra.mxu0 %v237_v1  ;;  %v248_v17 = vld [vmem:[%s377_s4] ss:$0 sm:$0xff] }
   0x7   :  { %v249_v57 = vld [vmem:[%s378_s5] ss:$0 sm:$0xff]  ;;  %s284_s5 = smov [#allocation2]  }
   0x8   :  { %117 = vmatpush.bf16.msra.mxu1 %v241_v6  ;;  %v250_v61 = vld [vmem:[%s379_s6] ss:$0 sm:$0xff]  ;;  %s197_s20 = sshll.u32 %s284_s5, 4  ;;  %s285_s6 = smov 128   ;;  %s198_s20 = int_to_ptr.vmem [resolvable:$true] %s197_s20 }
   0x9   :  { %219 = vmatmul.msk.bf16.vlgmr.msra.gmra.mxu0 %vm51_vm0, %v30_v4 }
   0xb   :  { %v252_v27 = vpop.eup %251 }
   0xc   :  { %118 = vmatpush.bf16.msra.mxu1 %v240_v7  ;;  %v135_v28 = vmul.f32 32.0, %v252_v27  ;;  %vm139_vm2 = vweird.f32 %v252_v27 }
   0xe   :  { %v136_v29 = vsub.f32 1.0, %v135_v28 }
  0x10   :  { %119 = vmatpush.bf16.msra.mxu1 %v239_v8  ;;  %v137_v30 = vmul.f32 %v252_v27, %v136_v29 }
  0x12   :  { %v138_v31 = vadd.f32 %v252_v27, %v137_v30 }
  0x14   :  { %v140_v32 = vsel %vm139_vm2, %v252_v27, %v138_v31 }
  0x86   :  { %v64_v9 = vpop.f32.mrf.mxu0 }
  0x87   :  { %v65_v11 = vadd.f32 %v247_v10, %v64_v9 }
  0x89   :  { %v69_v14 = vmax.f32 %v65_v11, 0.0 }
  0x8e   :  { %v66_v12 = vpop.f32.mrf.mxu0 }
  0x8f   :  { %v67_v13 = vadd.f32 %v247_v10, %v66_v12 }
  0x91   :  { %v70_v15 = vmax.f32 %v67_v13, 0.0 }
  0x93   :  { %v71_v16 = vpack.c.bf16 %v70_v15, %v69_v14 }
  0x95   :  { %236 = vmatmul.msk.bf16.vlgmr.msra.gmra.mxu1 %vm108_vm1, %v71_v16 }
 0x112   :  { %v121_v18 = vpop.f32.mrf.mxu1 }
 0x113   :  { %v122_v19 = vadd.f32 %v248_v17, %v121_v18 }
 0x115   :  { %v126_v20 = vadd.f32 %v122_v19, %v28_v2 }
 0x117   :  { %v128_v21 = vsel %vm51_vm0, %v126_v20, 0.0 }
 0x118   :  { %129 = vadd.xlane.f32.xlu0 %v128_v21 }
 0x11a   :  { %v123_v22 = vpop.f32.mrf.mxu1 }
 0x11b   :  { %v124_v23 = vadd.f32 %v248_v17, %v123_v22 }
 0x11d   :  { %v127_v24 = vadd.f32 %v124_v23, %v29_v3 }
 0x11f   :  { %v131_v25 = vsel %vm51_vm0, %v127_v24, 0.0 }
 0x120   :  { %132 = vadd.xlane.f32.xlu0 %v131_v25 }
 0x18b   :  { %v130_v33 = vpop.xlane.xlu0 %129 }
 0x18c   :  { %v141_v34 = vmul.f32 %v140_v32, %v130_v33 }
 0x18e   :  { %v143_v35 = vsub.f32 %v126_v20, %v141_v34 }
 0x190   :  { %v145_v36 = vmul.f32 %v143_v35, %v143_v35 }
 0x192   :  { %v147_v37 = vsel %vm51_vm0, %v145_v36, 0.0 }
 0x193   :  { %148 = vadd.xlane.f32.xlu1 %v147_v37  ;;  %v133_v38 = vpop.xlane.xlu0 %132 }
 0x194   :  { %v142_v39 = vmul.f32 %v140_v32, %v133_v38 }
 0x196   :  { %v144_v40 = vsub.f32 %v127_v24, %v142_v39 }
 0x198   :  { %v146_v41 = vmul.f32 %v144_v40, %v144_v40 }
 0x19a   :  { %v150_v42 = vsel %vm51_vm0, %v146_v41, 0.0 }
 0x19b   :  { %151 = vadd.xlane.f32.xlu1 %v150_v42 }
 0x206   :  { %v149_v43 = vpop.xlane.xlu1 %148 }
 0x207   :  { %v153_v44 = vmul.f32 %v149_v43, %v140_v32 }
 0x209   :  { %v155_v45 = vadd.f32 1e-06, %v153_v44 }
 0x20b   :  { %253 = vrsqrt.f32 %v155_v45  ;;  %vm163_vm4 = vweird.f32 %v155_v45 }
 0x20e   :  { %v152_v46 = vpop.xlane.xlu1 %151 }
 0x20f   :  { %v154_v47 = vmul.f32 %v152_v46, %v140_v32 }
 0x211   :  { %v254_v48 = vpop.eup %253  ;;  %v156_v49 = vadd.f32 1e-06, %v154_v47 }
 0x212   :  { %v158_v50 = vmul.f32 %v254_v48, %v155_v45  ;;  %vm164_vm3 = vweird.f32 %v254_v48 }
 0x213   :  { %255 = vrsqrt.f32 %v156_v49  ;;  %vm165_vm5 = vmor %vm163_vm4, %vm164_vm3  ;;  %vm173_vm7 = vweird.f32 %v156_v49 }
 0x214   :  { %v159_v51 = vmul.f32 %v254_v48, %v158_v50 }
 0x216   :  { %v160_v52 = vmul.f32 0.5, %v159_v51 }
 0x218   :  { %v161_v53 = vsub.f32 1.5, %v160_v52 }
 0x219   :  { %v256_v54 = vpop.eup %255 }
 0x21a   :  { %v162_v55 = vmul.f32 %v254_v48, %v161_v53  ;;  %v168_v56 = vmul.f32 %v256_v54, %v156_v49  ;;  %vm174_vm6 = vweird.f32 %v256_v54 }
 0x21b   :  { %vm175_vm8 = vmor %vm173_vm7, %vm174_vm6 }
 0x21c   :  { %v166_v58 = vsel %vm165_vm5, %v254_v48, %v162_v55  ;;  %v169_v59 = vmul.f32 %v256_v54, %v168_v56 }
 0x21d   :  { %v177_v60 = vmul.f32 %v166_v58, %v143_v35 }
 0x21e   :  { %v170_v62 = vmul.f32 0.5, %v169_v59 }
 0x21f   :  { %v183_v63 = vmul.f32 %v249_v57, %v177_v60 }
 0x220   :  { %v171_v0 = vsub.f32 1.5, %v170_v62 }
 0x221   :  { %v189_v1 = vadd.f32 %v250_v61, %v183_v63 }
 0x222   :  { %v172_v2 = vmul.f32 %v256_v54, %v171_v0 }
 0x223   :  { %191 = vst.msk [vmem:[#allocation2] sm:$0xff] %vm51_vm0, %v189_v1 }
 0x224   :  { %v176_v3 = vsel %vm175_vm8, %v256_v54, %v172_v2 }
 0x225   :  { %v178_v4 = vmul.f32 %v176_v3, %v144_v40 }
 0x227   :  { %v184_v5 = vmul.f32 %v249_v57, %v178_v4 }
 0x229   :  { %v190_v6 = vadd.f32 %v250_v61, %v184_v5 }
 0x22b   :  { %192 = vst.msk [vmem:[#allocation2 + $0x8] sm:$0xff] %vm51_vm0, %v190_v6 }
 0x22c   :  { %205 = dma.vmem_to_hbm [thread:$0]  %s198_s20, 256, %s200_s23, [#allocation3], %s285_s6, %s285_s6, %s286_s24  }
 0x22d   :  { %281 = dma.done.wait [#allocation3], 256  }
 0x22e   :  { %282 = vsyncadd [#allocation3], 4294967040 }
 0x22f   :  { %210 = vsyncpa [#allocation3], 1 }

</bundles_post_ra>
